<compile_context>
chip_gen: v7x
topology: tpu7x:2x2x1
jax: 0.10.0
libtpu: 0.0.40
codegen_flags: <defaults>
</compile_context>

<pallas_src>
import numpy as np
import jax
import jax.numpy as jnp
from jax import lax
from jax.experimental import pallas as pl
from jax.experimental.pallas import tpu as pltpu


# ---------------------------------------------------------------------------
# Deterministic operator matrices (host-side setup, plain numpy)
# ---------------------------------------------------------------------------
def _gauss_1d(kernel_size=5, sigma=1.0):
    """1-D weights whose outer product equals the module's normalized 2-D
    Gaussian: exp(-(x^2+y^2)/2s^2)/sum == outer(w, w)."""
    r = np.arange(-kernel_size // 2 + 1.0, kernel_size // 2 + 1.0)
    g = np.exp(-(r ** 2) / (2.0 * sigma ** 2))
    return g / g.sum()


def _gauss_conv_matrix(n, kernel_size=5, sigma=1.0):
    """Banded (n, n) matrix: 1-D Gaussian conv with ZERO padding (F.conv2d
    default padding_mode), so the 2-D blur is  Gh @ X @ Gw^T."""
    w = _gauss_1d(kernel_size, sigma)
    pad = kernel_size // 2
    G = np.zeros((n, n), dtype=np.float64)
    for i in range(n):
        for k in range(kernel_size):
            j = i + k - pad
            if 0 <= j < n:
                G[i, j] += w[k]
    return G


def _pool_matrix(n):
    """2x area downsampling (F.interpolate(scale_factor=0.5, mode='area'))."""
    P = np.zeros((n // 2, n), dtype=np.float64)
    for i in range(n // 2):
        P[i, 2 * i] = 0.5
        P[i, 2 * i + 1] = 0.5
    return P


# ---------------------------------------------------------------------------
# Pallas kernel: one batch of TILE_N images per grid step, all levels fused
# ---------------------------------------------------------------------------
def _make_pyramid_kernel(levels, batched_w_pass=False):
    n_down = levels - 1

    def kernel(*refs):
        x_ref = refs[0]
        mat_refs = refs[1:1 + 2 * n_down]      # [DwT_1, Dh_1, DwT_2, Dh_2, ...]
        out_refs = refs[1 + 2 * n_down:]       # one output ref per level >= 1

        tn, h, w = x_ref.shape                 # static Python ints
        cur = x_ref[...]                       # (TILE_N, h, w) float32
        for l in range(n_down):
            dwT = mat_refs[2 * l][...]         # (w, w//2)   bf16
            dh = mat_refs[2 * l + 1][...]      # (h//2, h)   bf16
            cdt = dwT.dtype

            # --- W axis: blur + 2x pool as one matmul.
            if batched_w_pass:
                # Fallback: fully batched matmul, no in-kernel reshape.
                dwT_b = jnp.broadcast_to(dwT, (tn, w, w // 2))
                y = lax.dot_general(
                    cur.astype(cdt), dwT_b,
                    dimension_numbers=(((2,), (1,)), ((0,), (0,))),
                    preferred_element_type=jnp.float32)           # (tn, h, w/2)
            else:
                # Preferred: collapse (tn, h) so the MXU M dim is filled by the
                # whole image batch.  h % 8 == 0 keeps the reshape layout-free.
                y = jnp.dot(cur.reshape(tn * h, w).astype(cdt), dwT,
                            preferred_element_type=jnp.float32)   # (tn*h, w/2)
                y = y.reshape(tn, h, w // 2)

            # --- H axis: blur + 2x pool as a batched matmul over the image
            # batch (same dot_general pattern as flash attention's p @ v);
            # avoids any in-kernel transpose.
            dh_b = jnp.broadcast_to(dh, (tn, h // 2, h))
            cur = lax.dot_general(
                dh_b, y.astype(cdt),
                dimension_numbers=(((2,), (1,)), ((0,), (0,))),
                preferred_element_type=jnp.float32)               # (tn, h/2, w/2)

            out_refs[l][...] = cur.astype(out_refs[l].dtype)
            h, w = h // 2, w // 2

    return kernel


def _pick_tile_n(N, H, W):
    """Images per grid step: target ~2 MiB of f32 input per block, keep >= 2
    grid steps when possible (v7x: 2 TensorCores), and divide N exactly."""
    target = max(1, (2 * 1024 * 1024) // (H * W * 4))
    target = min(target, 256, N)
    if N >= 2:
        target = min(target, max(1, N // 2))
    tn = max(1, target)
    while N % tn:
        tn -= 1
    return tn


def gaussian_pyramid(x, levels=3, kernel_size=5, sigma=1.0,
                     compute_dtype=jnp.bfloat16):
    """x: (B, C, V, H, W) float32 -> [lvl0, lvl1, ...] where lvl_l has shape
    (B, C, V, H >> l, W >> l) and dtype float32 (same as the torch module)."""
    assert kernel_size % 2 == 1, "odd kernel_size required (padding = ks // 2)"
    B, C, V, H, W = x.shape
    n_down = levels - 1
    if n_down <= 0:
        return [x]
    assert H % (1 << n_down) == 0 and W % (1 << n_down) == 0, \
        "H, W must be divisible by 2**(levels-1)"
    # keeps the in-kernel (TILE_N, h, w) <-> (TILE_N*h, w) reshapes aligned
    assert (H >> (n_down - 1)) % 8 == 0, "H >> (levels-2) must be a multiple of 8"

    N = B * C * V
    xr = x.reshape(N, H, W).astype(jnp.float32)     # metadata-only reshape

    # Banded downsample operators per level: Dw^T = (Pool_w @ Gauss_w)^T and
    # Dh = Pool_h @ Gauss_h, cast to bf16 (matmul operands); accumulation
    # stays in f32.
    mats = []
    h, w = H, W
    for _ in range(n_down):
        dw = _pool_matrix(w) @ _gauss_conv_matrix(w, kernel_size, sigma)
        dh = _pool_matrix(h) @ _gauss_conv_matrix(h, kernel_size, sigma)
        mats.append(jnp.asarray(dw.T, dtype=compute_dtype))   # (w, w//2)
        mats.append(jnp.asarray(dh, dtype=compute_dtype))     # (h//2, h)
        h, w = h // 2, w // 2
    # TODO(synk): for very large images (H, W >= ~512) replace the banded
    # matrix downsample with a separable 5-tap VPU convolution (shifted adds)
    # plus spatial tiling: the dense (h/2, h) operator does O(h) extra FLOPs
    # per output element and whole images may no longer fit a VMEM block.

    TILE_N = _pick_tile_n(N, H, W)
    grid = (N // TILE_N,)

    img_spec = pl.BlockSpec((TILE_N, H, W), lambda i: (i, 0, 0))
    # Constant-index matrix blocks: fetched once, VMEM resident (tiny, so the
    # default double-buffering costs nothing).
    mat_specs = [pl.BlockSpec(m.shape, lambda i: (0, 0)) for m in mats]

    out_specs = []
    out_shape = []
    h, w = H, W
    for _ in range(n_down):
        h, w = h // 2, w // 2
        out_specs.append(pl.BlockSpec((TILE_N, h, w), lambda i: (i, 0, 0)))
        out_shape.append(jax.ShapeDtypeStruct((N, h, w), jnp.float32))

    # Advisory cost estimate so XLA schedules neighbouring ops sensibly.
    flops = 0
    bytes_accessed = N * H * W * 4
    h, w = H, W
    for _ in range(n_down):
        flops += N * (2 * h * w * (w // 2) + 2 * (h // 2) * h * (w // 2))
        h, w = h // 2, w // 2
        bytes_accessed += N * h * w * 4
    bytes_accessed += sum(int(np.prod(m.shape)) * m.dtype.itemsize for m in mats)

    def _run(batched_w_pass):
        return pl.pallas_call(
            _make_pyramid_kernel(levels, batched_w_pass=batched_w_pass),
            out_shape=tuple(out_shape),
            grid_spec=pltpu.PrefetchScalarGridSpec(
                num_scalar_prefetch=0,
                grid=grid,
                in_specs=[img_spec] + mat_specs,
                out_specs=out_specs,
            ),
            compiler_params=pltpu.CompilerParams(
                dimension_semantics=("parallel",),
                vmem_limit_bytes=48 * 1024 * 1024,   # headroom on v7x (64 MiB)
            ),
            cost_estimate=pl.CostEstimate(flops=int(flops), transcendentals=0,
                                          bytes_accessed=int(bytes_accessed)),
        )(xr, *mats)

    try:
        outs = _run(False)   # M-filled (TILE_N*h, w) @ Dw^T slab formulation
    except Exception:        # defensive: fall back to the fully batched form
        outs = _run(True)
    if not isinstance(outs, (tuple, list)):
        outs = (outs,)

    # Level 0 is the raw input (no identity copy through the kernel, no concat
    # epilogue); per-level 5-D shapes are restored with free reshapes.
    pyramid = [x]
    h, w = H, W
    for o in outs:
        h, w = h // 2, w // 2
        pyramid.append(o.reshape(B, C, V, h, w))
    return pyramid


# ---------------------------------------------------------------------------
# Pure-numpy reference (same math, float64) for a sanity check
# ---------------------------------------------------------------------------
def _reference_pyramid(x_np, levels=3, kernel_size=5, sigma=1.0):
    B, C, V, H, W = x_np.shape
    cur = x_np.astype(np.float64).reshape(-1, H, W)
    pyr = [x_np.astype(np.float32)]
    h, w = H, W
    for _ in range(levels - 1):
        dh = _pool_matrix(h) @ _gauss_conv_matrix(h, kernel_size, sigma)
        dw = _pool_matrix(w) @ _gauss_conv_matrix(w, kernel_size, sigma)
        cur = np.einsum('ih,nhw,jw->nij', dh, cur, dw)
        h, w = h // 2, w // 2
        pyr.append(cur.reshape(B, C, V, h, w).astype(np.float32))
    return pyr


if __name__ == "__main__":
    key = jax.random.PRNGKey(0)
    # C = 1: the torch module's conv2d uses a (1, 1, 5, 5) filter with
    # groups=c, which only works for c == 1; this kernel handles any C.
    B, C, V, H, W = 2, 1, 8, 32, 32
    x = jax.random.normal(key, (B, C, V, H, W), dtype=jnp.float32)

    pyr = gaussian_pyramid(x, levels=3)
    pyr = jax.block_until_ready(pyr)

    assert len(pyr) == 3
    assert pyr[0].shape == (B, C, V, H, W)
    assert pyr[1].shape == (B, C, V, H // 2, W // 2)
    assert pyr[2].shape == (B, C, V, H // 4, W // 4)
    assert all(p.dtype == jnp.float32 for p in pyr)

    ref = _reference_pyramid(np.asarray(x), levels=3)
    for got, want in zip(pyr, ref):
        np.testing.assert_allclose(np.asarray(got), want, atol=1e-1, rtol=1e-1)

    print("KERNEL_OK")
</pallas_src>

<mosaic_0001>
module attributes {stable_mosaic.version = 11 : i64} {
  func.func @kernel(%arg0: i32, %arg1: memref<8x32x32xf32, #tpu.memory_space<vmem>>, %arg2: memref<32x16xbf16, #tpu.memory_space<vmem>>, %arg3: memref<16x32xbf16, #tpu.memory_space<vmem>>, %arg4: memref<16x8xbf16, #tpu.memory_space<vmem>>, %arg5: memref<8x16xbf16, #tpu.memory_space<vmem>>, %arg6: memref<8x16x16xf32, #tpu.memory_space<vmem>>, %arg7: memref<8x8x8xf32, #tpu.memory_space<vmem>>) attributes {dimension_semantics = [#tpu.dimension_semantics<parallel>], iteration_bounds = array<i64: 2>, scalar_prefetch = 0 : i64, scratch_operands = 0 : i64, tpu.core_type = #tpu.core_type<tc>, window_params = [{transform_indices = @transform_0, window_bounds = array<i64: 8, 32, 32>}, {pipeline_mode = #tpu.pipeline_mode<synchronous>, transform_indices = @transform_1, window_bounds = array<i64: 32, 16>}, {pipeline_mode = #tpu.pipeline_mode<synchronous>, transform_indices = @transform_2, window_bounds = array<i64: 16, 32>}, {pipeline_mode = #tpu.pipeline_mode<synchronous>, transform_indices = @transform_3, window_bounds = array<i64: 16, 8>}, {pipeline_mode = #tpu.pipeline_mode<synchronous>, transform_indices = @transform_4, window_bounds = array<i64: 8, 16>}, {transform_indices = @transform_5, window_bounds = array<i64: 8, 16, 16>}, {transform_indices = @transform_6, window_bounds = array<i64: 8, 8, 8>}]} {
    %c0 = arith.constant 0 : index
    %c0_0 = arith.constant 0 : index
    %c0_1 = arith.constant 0 : index
    %0 = vector.load %arg1[%c0, %c0_0, %c0_1] : memref<8x32x32xf32, #tpu.memory_space<vmem>>, vector<8x32x32xf32>
    %c0_2 = arith.constant 0 : index
    %c0_3 = arith.constant 0 : index
    %1 = vector.load %arg2[%c0_2, %c0_3] : memref<32x16xbf16, #tpu.memory_space<vmem>>, vector<32x16xbf16>
    %c0_4 = arith.constant 0 : index
    %c0_5 = arith.constant 0 : index
    %2 = vector.load %arg3[%c0_4, %c0_5] : memref<16x32xbf16, #tpu.memory_space<vmem>>, vector<16x32xbf16>
    %3 = vector.shape_cast %0 : vector<8x32x32xf32> to vector<256x32xf32>
    %4 = arith.truncf %3 : vector<256x32xf32> to vector<256x32xbf16>
    %cst = arith.constant dense<0.000000e+00> : vector<256x16xf32>
    %5 = tpu.matmul %4, %1, %cst {dimension_numbers = #tpu.dot_dimension_numbers<[1], [0], [0], [1], [0, 0, 1, 1], [], []>} : vector<256x32xbf16>, vector<32x16xbf16>, vector<256x16xf32> -> vector<256x16xf32>
    %6 = vector.shape_cast %5 : vector<256x16xf32> to vector<8x32x16xf32>
    %7 = vector.shape_cast %2 : vector<16x32xbf16> to vector<1x16x32xbf16>
    %8 = vector.broadcast %7 : vector<1x16x32xbf16> to vector<8x16x32xbf16>
    %9 = arith.truncf %6 : vector<8x32x16xf32> to vector<8x32x16xbf16>
    %cst_6 = arith.constant dense<0.000000e+00> : vector<8x16x16xf32>
    %10 = tpu.matmul %8, %9, %cst_6 {dimension_numbers = #tpu.dot_dimension_numbers<[2], [1], [1], [2], [0, 0, 0, 1, 1, 2], [0], [0]>} : vector<8x16x32xbf16>, vector<8x32x16xbf16>, vector<8x16x16xf32> -> vector<8x16x16xf32>
    %c0_7 = arith.constant 0 : index
    %c0_8 = arith.constant 0 : index
    %c0_9 = arith.constant 0 : index
    %11 = vector.load %arg6[%c0_7, %c0_8, %c0_9] : memref<8x16x16xf32, #tpu.memory_space<vmem>>, vector<8x16x16xf32>
    tpu.vector_store %arg6[%c0_7, %c0_8, %c0_9], %10 {strides = array<i32>} : memref<8x16x16xf32, #tpu.memory_space<vmem>>, vector<8x16x16xf32>,
    %c0_10 = arith.constant 0 : index
    %c0_11 = arith.constant 0 : index
    %12 = vector.load %arg4[%c0_10, %c0_11] : memref<16x8xbf16, #tpu.memory_space<vmem>>, vector<16x8xbf16>
    %c0_12 = arith.constant 0 : index
    %c0_13 = arith.constant 0 : index
    %13 = vector.load %arg5[%c0_12, %c0_13] : memref<8x16xbf16, #tpu.memory_space<vmem>>, vector<8x16xbf16>
    %14 = vector.shape_cast %10 : vector<8x16x16xf32> to vector<128x16xf32>
    %15 = arith.truncf %14 : vector<128x16xf32> to vector<128x16xbf16>
    %cst_14 = arith.constant dense<0.000000e+00> : vector<128x8xf32>
    %16 = tpu.matmul %15, %12, %cst_14 {dimension_numbers = #tpu.dot_dimension_numbers<[1], [0], [0], [1], [0, 0, 1, 1], [], []>} : vector<128x16xbf16>, vector<16x8xbf16>, vector<128x8xf32> -> vector<128x8xf32>
    %17 = vector.shape_cast %16 : vector<128x8xf32> to vector<8x16x8xf32>
    %18 = vector.shape_cast %13 : vector<8x16xbf16> to vector<1x8x16xbf16>
    %19 = vector.broadcast %18 : vector<1x8x16xbf16> to vector<8x8x16xbf16>
    %20 = arith.truncf %17 : vector<8x16x8xf32> to vector<8x16x8xbf16>
    %cst_15 = arith.constant dense<0.000000e+00> : vector<8x8x8xf32>
    %21 = tpu.matmul %19, %20, %cst_15 {dimension_numbers = #tpu.dot_dimension_numbers<[2], [1], [1], [2], [0, 0, 0, 1, 1, 2], [0], [0]>} : vector<8x8x16xbf16>, vector<8x16x8xbf16>, vector<8x8x8xf32> -> vector<8x8x8xf32>
    %c0_16 = arith.constant 0 : index
    %c0_17 = arith.constant 0 : index
    %c0_18 = arith.constant 0 : index
    %22 = vector.load %arg7[%c0_16, %c0_17, %c0_18] : memref<8x8x8xf32, #tpu.memory_space<vmem>>, vector<8x8x8xf32>
    tpu.vector_store %arg7[%c0_16, %c0_17, %c0_18], %21 {strides = array<i32>} : memref<8x8x8xf32, #tpu.memory_space<vmem>>, vector<8x8x8xf32>,
    return
  }
  func.func @transform_0(%arg0: i32) -> (i32, i32, i32) {
    %c0_i32 = arith.constant 0 : i32
    %c0_i32_0 = arith.constant 0 : i32
    %c0_i32_1 = arith.constant 0 : i32
    return %arg0, %c0_i32, %c0_i32_0 : i32, i32, i32
  }
  func.func @transform_1(%arg0: i32) -> (i32, i32) {
    %c0_i32 = arith.constant 0 : i32
    %c0_i32_0 = arith.constant 0 : i32
    %c0_i32_1 = arith.constant 0 : i32
    return %c0_i32, %c0_i32_0 : i32, i32
  }
  func.func @transform_2(%arg0: i32) -> (i32, i32) {
    %c0_i32 = arith.constant 0 : i32
    %c0_i32_0 = arith.constant 0 : i32
    %c0_i32_1 = arith.constant 0 : i32
    return %c0_i32, %c0_i32_0 : i32, i32
  }
  func.func @transform_3(%arg0: i32) -> (i32, i32) {
    %c0_i32 = arith.constant 0 : i32
    %c0_i32_0 = arith.constant 0 : i32
    %c0_i32_1 = arith.constant 0 : i32
    return %c0_i32, %c0_i32_0 : i32, i32
  }
  func.func @transform_4(%arg0: i32) -> (i32, i32) {
    %c0_i32 = arith.constant 0 : i32
    %c0_i32_0 = arith.constant 0 : i32
    %c0_i32_1 = arith.constant 0 : i32
    return %c0_i32, %c0_i32_0 : i32, i32
  }
  func.func @transform_5(%arg0: i32) -> (i32, i32, i32) {
    %c0_i32 = arith.constant 0 : i32
    %c0_i32_0 = arith.constant 0 : i32
    %c0_i32_1 = arith.constant 0 : i32
    return %arg0, %c0_i32, %c0_i32_0 : i32, i32, i32
  }
  func.func @transform_6(%arg0: i32) -> (i32, i32, i32) {
    %c0_i32 = arith.constant 0 : i32
    %c0_i32_0 = arith.constant 0 : i32
    %c0_i32_1 = arith.constant 0 : i32
    return %arg0, %c0_i32, %c0_i32_0 : i32, i32, i32
  }
}

module attributes {stable_mosaic.version = 11 : i64} {
  func.func @kernel(%arg0: i32, %arg1: memref<8x32x32xf32, #tpu.memory_space<vmem>>, %arg2: memref<32x16xbf16, #tpu.memory_space<vmem>>, %arg3: memref<16x32xbf16, #tpu.memory_space<vmem>>, %arg4: memref<16x8xbf16, #tpu.memory_space<vmem>>, %arg5: memref<8x16xbf16, #tpu.memory_space<vmem>>, %arg6: memref<8x16x16xf32, #tpu.memory_space<vmem>>, %arg7: memref<8x8x8xf32, #tpu.memory_space<vmem>>) attributes {dimension_semantics = [#tpu.dimension_semantics<parallel>], iteration_bounds = array<i64: 2>, scalar_prefetch = 0 : i64, scratch_operands = 0 : i64, tpu.core_type = #tpu.core_type<tc>, window_params = [{transform_indices = @transform_0, window_bounds = array<i64: 8, 32, 32>}, {pipeline_mode = #tpu.pipeline_mode<synchronous>, transform_indices = @transform_1, window_bounds = array<i64: 32, 16>}, {pipeline_mode = #tpu.pipeline_mode<synchronous>, transform_indices = @transform_2, window_bounds = array<i64: 16, 32>}, {pipeline_mode = #tpu.pipeline_mode<synchronous>, transform_indices = @transform_3, window_bounds = array<i64: 16, 8>}, {pipeline_mode = #tpu.pipeline_mode<synchronous>, transform_indices = @transform_4, window_bounds = array<i64: 8, 16>}, {transform_indices = @transform_5, window_bounds = array<i64: 8, 16, 16>}, {transform_indices = @transform_6, window_bounds = array<i64: 8, 8, 8>}]} {
    %c0 = arith.constant 0 : index
    %c0_0 = arith.constant 0 : index
    %c0_1 = arith.constant 0 : index
    %0 = vector.load %arg1[%c0, %c0_0, %c0_1] : memref<8x32x32xf32, #tpu.memory_space<vmem>>, vector<8x32x32xf32>
    %c0_2 = arith.constant 0 : index
    %c0_3 = arith.constant 0 : index
    %1 = vector.load %arg2[%c0_2, %c0_3] : memref<32x16xbf16, #tpu.memory_space<vmem>>, vector<32x16xbf16>
    %c0_4 = arith.constant 0 : index
    %c0_5 = arith.constant 0 : index
    %2 = vector.load %arg3[%c0_4, %c0_5] : memref<16x32xbf16, #tpu.memory_space<vmem>>, vector<16x32xbf16>
    %3 = vector.shape_cast %1 : vector<32x16xbf16> to vector<1x32x16xbf16>
    %4 = vector.broadcast %3 : vector<1x32x16xbf16> to vector<8x32x16xbf16>
    %5 = arith.truncf %0 : vector<8x32x32xf32> to vector<8x32x32xbf16>
    %cst = arith.constant dense<0.000000e+00> : vector<8x32x16xf32>
    %6 = tpu.matmul %5, %4, %cst {dimension_numbers = #tpu.dot_dimension_numbers<[2], [1], [1], [2], [0, 0, 0, 1, 1, 2], [0], [0]>} : vector<8x32x32xbf16>, vector<8x32x16xbf16>, vector<8x32x16xf32> -> vector<8x32x16xf32>
    %7 = vector.shape_cast %2 : vector<16x32xbf16> to vector<1x16x32xbf16>
    %8 = vector.broadcast %7 : vector<1x16x32xbf16> to vector<8x16x32xbf16>
    %9 = arith.truncf %6 : vector<8x32x16xf32> to vector<8x32x16xbf16>
    %cst_6 = arith.constant dense<0.000000e+00> : vector<8x16x16xf32>
    %10 = tpu.matmul %8, %9, %cst_6 {dimension_numbers = #tpu.dot_dimension_numbers<[2], [1], [1], [2], [0, 0, 0, 1, 1, 2], [0], [0]>} : vector<8x16x32xbf16>, vector<8x32x16xbf16>, vector<8x16x16xf32> -> vector<8x16x16xf32>
    %c0_7 = arith.constant 0 : index
    %c0_8 = arith.constant 0 : index
    %c0_9 = arith.constant 0 : index
    %11 = vector.load %arg6[%c0_7, %c0_8, %c0_9] : memref<8x16x16xf32, #tpu.memory_space<vmem>>, vector<8x16x16xf32>
    tpu.vector_store %arg6[%c0_7, %c0_8, %c0_9], %10 {strides = array<i32>} : memref<8x16x16xf32, #tpu.memory_space<vmem>>, vector<8x16x16xf32>,
    %c0_10 = arith.constant 0 : index
    %c0_11 = arith.constant 0 : index
    %12 = vector.load %arg4[%c0_10, %c0_11] : memref<16x8xbf16, #tpu.memory_space<vmem>>, vector<16x8xbf16>
    %c0_12 = arith.constant 0 : index
    %c0_13 = arith.constant 0 : index
    %13 = vector.load %arg5[%c0_12, %c0_13] : memref<8x16xbf16, #tpu.memory_space<vmem>>, vector<8x16xbf16>
    %14 = vector.shape_cast %12 : vector<16x8xbf16> to vector<1x16x8xbf16>
    %15 = vector.broadcast %14 : vector<1x16x8xbf16> to vector<8x16x8xbf16>
    %16 = arith.truncf %10 : vector<8x16x16xf32> to vector<8x16x16xbf16>
    %cst_14 = arith.constant dense<0.000000e+00> : vector<8x16x8xf32>
    %17 = tpu.matmul %16, %15, %cst_14 {dimension_numbers = #tpu.dot_dimension_numbers<[2], [1], [1], [2], [0, 0, 0, 1, 1, 2], [0], [0]>} : vector<8x16x16xbf16>, vector<8x16x8xbf16>, vector<8x16x8xf32> -> vector<8x16x8xf32>
    %18 = vector.shape_cast %13 : vector<8x16xbf16> to vector<1x8x16xbf16>
    %19 = vector.broadcast %18 : vector<1x8x16xbf16> to vector<8x8x16xbf16>
    %20 = arith.truncf %17 : vector<8x16x8xf32> to vector<8x16x8xbf16>
    %cst_15 = arith.constant dense<0.000000e+00> : vector<8x8x8xf32>
    %21 = tpu.matmul %19, %20, %cst_15 {dimension_numbers = #tpu.dot_dimension_numbers<[2], [1], [1], [2], [0, 0, 0, 1, 1, 2], [0], [0]>} : vector<8x8x16xbf16>, vector<8x16x8xbf16>, vector<8x8x8xf32> -> vector<8x8x8xf32>
    %c0_16 = arith.constant 0 : index
    %c0_17 = arith.constant 0 : index
    %c0_18 = arith.constant 0 : index
    %22 = vector.load %arg7[%c0_16, %c0_17, %c0_18] : memref<8x8x8xf32, #tpu.memory_space<vmem>>, vector<8x8x8xf32>
    tpu.vector_store %arg7[%c0_16, %c0_17, %c0_18], %21 {strides = array<i32>} : memref<8x8x8xf32, #tpu.memory_space<vmem>>, vector<8x8x8xf32>,
    return
  }
  func.func @transform_0(%arg0: i32) -> (i32, i32, i32) {
    %c0_i32 = arith.constant 0 : i32
    %c0_i32_0 = arith.constant 0 : i32
    %c0_i32_1 = arith.constant 0 : i32
    return %arg0, %c0_i32, %c0_i32_0 : i32, i32, i32
  }
  func.func @transform_1(%arg0: i32) -> (i32, i32) {
    %c0_i32 = arith.constant 0 : i32
    %c0_i32_0 = arith.constant 0 : i32
    %c0_i32_1 = arith.constant 0 : i32
    return %c0_i32, %c0_i32_0 : i32, i32
  }
  func.func @transform_2(%arg0: i32) -> (i32, i32) {
    %c0_i32 = arith.constant 0 : i32
    %c0_i32_0 = arith.constant 0 : i32
    %c0_i32_1 = arith.constant 0 : i32
    return %c0_i32, %c0_i32_0 : i32, i32
  }
  func.func @transform_3(%arg0: i32) -> (i32, i32) {
    %c0_i32 = arith.constant 0 : i32
    %c0_i32_0 = arith.constant 0 : i32
    %c0_i32_1 = arith.constant 0 : i32
    return %c0_i32, %c0_i32_0 : i32, i32
  }
  func.func @transform_4(%arg0: i32) -> (i32, i32) {
    %c0_i32 = arith.constant 0 : i32
    %c0_i32_0 = arith.constant 0 : i32
    %c0_i32_1 = arith.constant 0 : i32
    return %c0_i32, %c0_i32_0 : i32, i32
  }
  func.func @transform_5(%arg0: i32) -> (i32, i32, i32) {
    %c0_i32 = arith.constant 0 : i32
    %c0_i32_0 = arith.constant 0 : i32
    %c0_i32_1 = arith.constant 0 : i32
    return %arg0, %c0_i32, %c0_i32_0 : i32, i32, i32
  }
  func.func @transform_6(%arg0: i32) -> (i32, i32, i32) {
    %c0_i32 = arith.constant 0 : i32
    %c0_i32_0 = arith.constant 0 : i32
    %c0_i32_1 = arith.constant 0 : i32
    return %arg0, %c0_i32, %c0_i32_0 : i32, i32, i32
  }
}

</mosaic_0001>

<bundles_post_ra>
// kernel: tpu_custom_call.1
= control target key start
LH: loop header
LB: loop body
LE: loop exit
PB: predicated region body
PF: predicated region fallthrough
CT: control target
= control target key end

     0   :  { %12 = vsyncpa [#allocation3], 0  ;;  %s2404_s0 = inlined_call_operand.hbm [shape: f32[16,32,32], index: 0, kind: input, shape index: {}]   ;;  %s2405_s1 = inlined_call_operand.vmem [shape: bf16[32,16], index: 1, kind: input, shape index: {}]   ;;  %s2406_s2 = inlined_call_operand.vmem [shape: bf16[16,32], index: 2, kind: input, shape index: {}]   ;;  %s2407_s3 = inlined_call_operand.vmem [shape: bf16[16,8], index: 3, kind: input, shape index: {}]   ;;  %s2408_s4 = inlined_call_operand.vmem [shape: bf16[8,16], index: 4, kind: input, shape index: {}]   ;;  %s2409_s5 = inlined_call_operand.hbm [shape: f32[16,16,16], index: 5, kind: output, shape index: {0}]   ;;  %s2410_s6 = inlined_call_operand.vmem [shape: f32[16,8,8], index: 6, kind: output, shape index: {1}]  }
   0x1   :  { %14 = vsyncpa [#allocation3 + $0x1], 0 }
   0x2   :  { %15 = vsyncpa [#allocation4], 0 }
   0x3   :  { %17 = vsyncpa [#allocation4 + $0x1], 0  ;;  %s2029_s21 = smov 0   ;;  %s2031_s22 = smov 0  }
   0x4   :  { %s2033_s23 = smov 0   ;;  %s2035_s24 = smov 0  }
   0x5 LB: > { %s2050_s25 = sadd.s32 4294967295, %s1984_s24   ;;  %s1533_s26 = sadd.s32 4294967294, %s1984_s24   ;;  %s1984_s24 = sphi %s2035_s24, %s2423_s24   ;;  %s1980_s23 = sphi %s2033_s23, %s2422_s23   ;;  %s1976_s22 = sphi %s2031_s22, %s2421_s22   ;;  %s1972_s21 = sphi %s2029_s21, %s2420_s21  }
   0x6   : > { %s2054_s27 = sadd.s32 1, %s1984_s24   ;;  %s30_s28 = sadd.s32 1, %s1980_s23 }
   0x7   : > { %s27_s29 = ssub.s32 %s1984_s24, %s2054_s27  ;;  %p37_p0 = scmp.ne.s32.totalorder %s1980_s23, %s1976_s22 }
   0x8   : > { %p28_p1 = scmp.eq.s32.totalorder %s27_s29, 0  ;;  %p38_p2 = scmp.eq.s32.totalorder %s1984_s24, 0 }
   0x9   : > { %p43_p3 = scmp.ne.s32.totalorder %s1976_s22, %s1972_s21  ;;  %p44_p4 = scmp.eq.s32.totalorder %s2050_s25, 0 }
   0xa   : > { %s2066_s30 = scalar_select %p28_p1, %s1980_s23, %s30_s28  }
   0xb   : > { %p2068_p5 = por %p38_p2, %p37_p0  ;;  %p2072_p6 = por %p44_p4, %p43_p3 }
   0xc   : > { %p151_p7 = scmp.eq.s32.totalorder %s2050_s25, 1  ;;  %p157_p8 = scmp.eq.s32.totalorder %s1533_s26, 1 }
   0xd   : > { %p1844_p10 = scmp.lt.s32.totalorder %s1984_s24, 2  ;;  %s215_s11 = sand.u32 1, %s1980_s23  }
   0xe   : > { %p2079_p11 = por %p151_p7, %p37_p0  ;;  %p2083_p12 = por %p157_p8, %p43_p3 }
   0xf   : > { %s1596_s12 = sshll.u32 %s1984_s24, 12  ;;  %s1536_s13 = sshll.u32 %s215_s11, 8 }
  0x10   : > { %s2414_s9 = scalar_select %p2079_p11, 1, 0 }
  0x11   : > { %s2415_s10 = scalar_select %p2083_p12, 1, 0 }
  0x12   : > { %s2092_s16 = scalar_lea.hbm %s2404_s0, %s1596_s12  ;;  %s219_s17 = scalar_lea.vmem [#allocation2], %s1536_s13 }
  0x13   : > { %s227_s18 = sshll.u32 %s219_s17, 4  ;;  %p2096_p13 = pnand %p1844_p10, %p2068_p5  ;;  %s2100_s18 = int_to_ptr.vmem [resolvable:$true] %s227_s18 }
  0x14   : > { %s2102_s20 = scalar_lea.sflag [#allocation3], %s215_s11  ;;  %s1888_s26 = scalar_lea.hbm %s2092_s16, 4096 }
  0x15   : > { %p1889_p0 = scmp.ne.s32.totalorder %s2092_s16, %s1888_s26  ;;  %p1890_p1 = pneg %p2096_p13 }
  0x16   : > { %s1893_s7 = scalar_lea.hbm %s2404_s0, 8192  ;;  %p1894_p4 = scmp.lt.u32.totalorder %s2092_s16, %s2404_s0 }
  0x17   : > { %p1891_p2 = pnand %p1890_p1, %p1889_p0  ;;  %p1895_p5 = scmp.lt.u32.totalorder %s1893_s7, %s1888_s26 }
  0x18   : > { %p1897_p8 = scmp.lt.u32.totalorder %s1888_s26, %s2092_s16 }
  0x19   : > { %p1892_p3 = pneg %p1891_p2  ;;  %p1896_p7 = por %p1895_p5, %p1894_p4 }
  0x1b   : > { %p1898_p10 = por %p1897_p8, %p1896_p7 }
  0x1d   : > { %p1899_p9 = pnand %p1898_p10, %p1892_p3 }
  0x1f   : > { %1902 = shalt.err (!%p1899_p9)
}
  0x20   : > { %s1903_s11 = scalar_lea.vmem %s2100_s18, 4096  ;;  %s1986_s14 = smov [#allocation2]  }
  0x21   : > { %p1904_p0 = scmp.ne.s32.totalorder %s2100_s18, %s1903_s11  ;;  %s1908_s15 = sshll.u32 %s1986_s14, 4  ;;  %s1909_s15 = int_to_ptr.vmem [resolvable:$false] %s1908_s15 }
  0x22   : > { %s1910_s17 = scalar_lea.vmem %s1909_s15, 8192  ;;  %p1911_p11 = scmp.lt.s32.totalorder %s2100_s18, %s1909_s15 }
  0x23   : > { %p1906_p2 = pnand %p1904_p0, %p1890_p1  ;;  %p1912_p4 = scmp.lt.s32.totalorder %s1910_s17, %s1903_s11 }
  0x25   : > { %p1907_p12 = pneg %p1906_p2  ;;  %p1913_p5 = por %p1912_p4, %p1911_p11 }
  0x27   : > { %p1914_p7 = pnand %p1913_p5, %p1907_p12 }
  0x29   : > { %1917 = shalt.err (!%p1914_p7)
}
  0x2a   : > { %s1987_s26 = smov 128   ;;  %s1988_s28 = smov 8  }
  0x2b   : > { %1839 = dma.hbm_to_vmem [thread:$0]  (!%p2096_p13), %s2092_s16, 4096, %s2100_s18, %s2102_s20, %s1987_s26, %s1987_s26, %s1988_s28  }
  0x2c   : > { %p1540_p9 = scmp.ge.s32.totalorder %s1984_s24, 1  ;;  %p235_p1 = scmp.lt.s32.totalorder %s1984_s24, 3 }
  0x2e   : > { %p236_p3 = pnand %p1540_p9, %p235_p1 }
  0x2f   : > { %s2133_s29 = sand.u32 (!%p236_p3), 1, %s1976_s22  }
  0x30   : > { %239 = sbr.rel (%p236_p3) target bundleno = 996 (0x3e4), region = 40  ;;  %s1541_s7 = sshll.u32 (!%p236_p3), %s2133_s29, 8 }
  0x31   : > { %s242_s12 = scalar_lea.sflag (!%p236_p3), [#allocation3], %s2133_s29  ;;  %s2137_s13 = scalar_lea.vmem (!%p236_p3), [#allocation2], %s1541_s7 }
  0x37   : > { %1963 = dma.done.wait (%p2072_p6), %s242_s12, 4096  }
  0x38   : > { %1965 = vsyncadd (%p2072_p6), %s242_s12, 4294963200  ;;  %v1884_v0 = vld [vmem:[%s2405_s1] sm:$0xff]   ;;  %v1885_v1 = vld [vmem:[%s2405_s1 + $0x8] sm:$0xff]   ;;  %vm354_vm0 = vcmask 261120   ;;  %v1989_v50 = vmov 0.0   ;;  %vm1990_vm1 = vmmov 0  }
  0x39   : > { %1666 = vmatprep.subr.bf16.mxu0 %v1884_v0  ;;  %v288_v2 = vld [vmem:[%s2137_s13] sm:$0xff]  ;;  %v289_v3 = vld [vmem:[%s2137_s13 + $0x8] sm:$0xff]  ;;  %v290_v5 = vld [vmem:[%s2137_s13 + $0x10] sm:$0xff]  ;;  %1702 = vmatprep.subr.bf16.mxu1 %v1989_v50  ;;  %s1542_s17 = sshll.u32 %s2133_s29, 7  ;;  %vm916_vm2 = vcmask 130048   ;;  %s1598_s12 = sshll.u32 %s2050_s25, 11 }
  0x3a   : > { %1667 = vmatpush3.bf16.msra.mxu0 %v1884_v0  ;;  %v326_v4 = vpack.c.bf16 %v289_v3, %v288_v2  ;;  %v291_v6 = vld [vmem:[%s2137_s13 + $0x18] sm:$0xff]  ;;  %v292_v7 = vld [vmem:[%s2137_s13 + $0x20] sm:$0xff]  ;;  %v293_v8 = vld [vmem:[%s2137_s13 + $0x28] sm:$0xff]  ;;  %1706 = vmatprep.mubr.msk.bf16.mxu1 %vm1990_vm1, %v1989_v50  ;;  %s2258_s26 = scalar_lea.vmem [#allocation5], %s1542_s17  ;;  %s2336_s19 = scalar_lea.hbm %s2409_s5, %s1598_s12 }
  0x3b   : > { %1668 = vmatprep.subr.bf16.mxu0 %v1885_v1  ;;  %v327_v9 = vpack.c.bf16 %v291_v6, %v290_v5  ;;  %v328_v10 = vpack.c.bf16 %v293_v8, %v292_v7  ;;  %v294_v11 = vld [vmem:[%s2137_s13 + $0x30] sm:$0xff]  ;;  %v295_v12 = vld [vmem:[%s2137_s13 + $0x38] sm:$0xff]  ;;  %v296_v13 = vld [vmem:[%s2137_s13 + $0x40] sm:$0xff]  ;;  %s1412_s20 = scalar_lea.sflag [#allocation4], %s2133_s29  ;;  %p2417_p11 = scmp.ne.s32.totalorder %s2414_s9, 0 }
  0x3c   : > { %1670 = vmatprep.mubr.msk.bf16.mxu0 %vm354_vm0, %v326_v4  ;;  %v297_v14 = vld [vmem:[%s2137_s13 + $0x48] sm:$0xff]  ;;  %v329_v15 = vpack.c.bf16 %v295_v12, %v294_v11  ;;  %v298_v17 = vld [vmem:[%s2137_s13 + $0x50] sm:$0xff]  ;;  %v299_v18 = vld [vmem:[%s2137_s13 + $0x58] sm:$0xff]  ;;  %s1991_s11 = smov [#allocation5]  }
  0x3d   : > { %v330_v16 = vpack.c.bf16 %v297_v14, %v296_v13  ;;  %v300_v19 = vld [vmem:[%s2137_s13 + $0x60] sm:$0xff]  ;;  %v301_v20 = vld [vmem:[%s2137_s13 + $0x68] sm:$0xff]  ;;  %v331_v21 = vpack.c.bf16 %v299_v18, %v298_v17  ;;  %v302_v23 = vld [vmem:[%s2137_s13 + $0x70] sm:$0xff]  ;;  %s1922_s14 = sshll.u32 %s1991_s11, 4  ;;  %s1923_s14 = int_to_ptr.vmem [resolvable:$false] %s1922_s14 }
  0x3e   : > { %1669 = vmatpush3.bf16.msra.mxu0 %v1885_v1  ;;  %v332_v22 = vpack.c.bf16 %v301_v20, %v300_v19  ;;  %v303_v24 = vld [vmem:[%s2137_s13 + $0x78] sm:$0xff]  ;;  %v304_v25 = vld [vmem:[%s2137_s13 + $0x80] sm:$0xff]  ;;  %v305_v26 = vld [vmem:[%s2137_s13 + $0x88] sm:$0xff]  ;;  %s1924_s15 = scalar_lea.vmem %s1923_s14, 4096 }
  0x3f   : > { %v333_v27 = vpack.c.bf16 %v303_v24, %v302_v23  ;;  %v334_v28 = vpack.c.bf16 %v305_v26, %v304_v25  ;;  %v306_v29 = vld [vmem:[%s2137_s13 + $0x90] sm:$0xff]  ;;  %v307_v30 = vld [vmem:[%s2137_s13 + $0x98] sm:$0xff]  ;;  %v308_v31 = vld [vmem:[%s2137_s13 + $0xa0] sm:$0xff] }
  0x40   : > { %v309_v32 = vld [vmem:[%s2137_s13 + $0xa8] sm:$0xff]  ;;  %v335_v33 = vpack.c.bf16 %v307_v30, %v306_v29  ;;  %v310_v35 = vld [vmem:[%s2137_s13 + $0xb0] sm:$0xff]  ;;  %v311_v36 = vld [vmem:[%s2137_s13 + $0xb8] sm:$0xff] }
  0x41   : > { %1671 = vmatmul.mubr.msk.bf16.vlgmr.msra.gmra.mrb[0].mxu0 %vm354_vm0, %v327_v9  ;;  %v336_v34 = vpack.c.bf16 %v309_v32, %v308_v31  ;;  %v312_v37 = vld [vmem:[%s2137_s13 + $0xc0] sm:$0xff]  ;;  %v313_v38 = vld [vmem:[%s2137_s13 + $0xc8] sm:$0xff]  ;;  %v337_v39 = vpack.c.bf16 %v311_v36, %v310_v35  ;;  %v314_v41 = vld [vmem:[%s2137_s13 + $0xd0] sm:$0xff] }
  0x42   : > { %1674 = vmatprep.mubr.msk.bf16.mxu0 %vm354_vm0, %v328_v10  ;;  %v338_v40 = vpack.c.bf16 %v313_v38, %v312_v37  ;;  %v315_v42 = vld [vmem:[%s2137_s13 + $0xd8] sm:$0xff]  ;;  %v316_v43 = vld [vmem:[%s2137_s13 + $0xe0] sm:$0xff]  ;;  %v317_v44 = vld [vmem:[%s2137_s13 + $0xe8] sm:$0xff] }
  0x43   : > { %v339_v45 = vpack.c.bf16 %v315_v42, %v314_v41  ;;  %v340_v46 = vpack.c.bf16 %v317_v44, %v316_v43  ;;  %v318_v47 = vld [vmem:[%s2137_s13 + $0xf0] sm:$0xff]  ;;  %v319_v48 = vld [vmem:[%s2137_s13 + $0xf8] sm:$0xff]  ;;  %v1887_v51 = vld [vmem:[%s2407_s3] sm:$0xff]   ;;  %s1431_s13 = sshll.u32 %s2258_s26, 4  ;;  %s2338_s13 = int_to_ptr.vmem [resolvable:$true] %s1431_s13 }
  0x44   : > { %v341_v49 = vpack.c.bf16 %v319_v48, %v318_v47  ;;  %1766 = vmatprep.subr.bf16.mxu0 %v1887_v51  ;;  %v2208_v60 = vld [vmem:[%s2406_s2] sm:$0xff]   ;;  %s1918_s8 = scalar_lea.vmem %s2338_s13, 2048  ;;  %p1925_p8 = scmp.lt.s32.totalorder %s2338_s13, %s1923_s14 }
  0x45   : > { %1767 = vmatpush3.bf16.msra.mxu0 %v1887_v51  ;;  %p1919_p6 = scmp.ne.s32.totalorder %s2338_s13, %s1918_s8  ;;  %p1926_p10 = scmp.lt.s32.totalorder %s1924_s15, %s1918_s8 }
  0x46   : > { %1808 = vmatprep.subr.bf16.mxu0 %v1989_v50 }
  0x47   : > { %p1920_p12 = pnand %p1919_p6, %p2417_p11  ;;  %p1927_p0 = por %p1926_p10, %p1925_p8 }
  0x49   : > { %1675 = vmatmul.mubr.msk.bf16.gmra.mrb[4].mxu0 %vm354_vm0, %v329_v15  ;;  %p1921_p13 = pneg %p1920_p12 }
  0x4a   : > { %1678 = vmatprep.mubr.msk.bf16.mxu0 %vm354_vm0, %v330_v16 }
  0x4b   : > { %p1928_p2 = pnand %p1927_p0, %p1921_p13 }
  0x51   : > { %1679 = vmatmul.mubr.msk.bf16.gmra.mrb[8].mxu0 %vm354_vm0, %v331_v21 }
  0x52   : > { %1682 = vmatprep.mubr.msk.bf16.mxu0 %vm354_vm0, %v332_v22 }
  0x59   : > { %1683 = vmatmul.mubr.msk.bf16.gmra.mrb[12].mxu0 %vm354_vm0, %v333_v27 }
  0x5a   : > { %1686 = vmatprep.mubr.msk.bf16.mxu0 %vm354_vm0, %v334_v28 }
  0x61   : > { %1687 = vmatmul.mubr.msk.bf16.gmra.mrb[16].mxu0 %vm354_vm0, %v335_v33 }
  0x62   : > { %1690 = vmatprep.mubr.msk.bf16.mxu0 %vm354_vm0, %v336_v34 }
  0x69   : > { %1691 = vmatmul.mubr.msk.bf16.gmra.mrb[20].mxu0 %vm354_vm0, %v337_v39 }
  0x6a   : > { %1694 = vmatprep.mubr.msk.bf16.mxu0 %vm354_vm0, %v338_v40 }
  0x71   : > { %1695 = vmatmul.mubr.msk.bf16.gmra.mrb[24].mxu0 %vm354_vm0, %v339_v45 }
  0x72   : > { %1698 = vmatprep.mubr.msk.bf16.mxu0 %vm354_vm0, %v340_v46 }
  0x79   : > { %1699 = vmatmul.mubr.msk.bf16.gmra.mrb[28].mxu0 %vm354_vm0, %v341_v49 }
 0x114   : > { %v1672_v52 = vpop.f32.mrb[0].mxu0 }
 0x115   : > { %v437_v53 = vpop.f32.mrb[1].mxu0 }
 0x116   : > { %v1673_v54 = vpop.f32.mrb[2].mxu0 }
 0x117   : > { %v565_v55 = vpack.c.bf16 %v1673_v54, %v1672_v52  ;;  %v440_v56 = vpop.f32.mrb[3].mxu0 }
 0x118   : > { %v564_v57 = vpack.c.bf16 %v440_v56, %v437_v53 }
 0x11a   : > { %1703 = vmatpush3.bf16.msra.mxu1 %v564_v57 }
 0x11b   : > { %1704 = vmatprep.subr.bf16.mxu1 %v1989_v50 }
 0x11c   : > { %v1676_v58 = vpop.f32.mrb[4].mxu0 }
 0x11d   : > { %v453_v59 = vpop.f32.mrb[5].mxu0 }
 0x11e   : > { %v1677_v61 = vpop.f32.mrb[6].mxu0  ;;  %1705 = vmatpush3.bf16.msra.mxu1 %v565_v55 }
 0x11f   : > { %v567_v62 = vpack.c.bf16 %v1677_v61, %v1676_v58  ;;  %v456_v63 = vpop.f32.mrb[7].mxu0  ;;  %1710 = vmatprep.subr.bf16.mxu1 %v1989_v50 }
 0x120   : > { %v566_v0 = vpack.c.bf16 %v456_v63, %v453_v59 }
 0x121   : > { %1707 = vmatmul.mubr.msk.bf16.vlgmr.msra.gmra.mrb[0].mxu1 %vm354_vm0, %v2208_v60 }
 0x122   : > { %1711 = vmatpush3.bf16.msra.mxu1 %v566_v0  ;;  %1714 = vmatprep.mubr.msk.bf16.mxu1 %vm1990_vm1, %v1989_v50 }
 0x123   : > { %1712 = vmatprep.subr.bf16.mxu1 %v1989_v50 }
 0x124   : > { %v1680_v1 = vpop.f32.mrb[8].mxu0 }
 0x125   : > { %v469_v2 = vpop.f32.mrb[9].mxu0 }
 0x126   : > { %v1681_v3 = vpop.f32.mrb[10].mxu0  ;;  %1713 = vmatpush3.bf16.msra.mxu1 %v567_v62 }
 0x127   : > { %v569_v4 = vpack.c.bf16 %v1681_v3, %v1680_v1  ;;  %v472_v5 = vpop.f32.mrb[11].mxu0  ;;  %1718 = vmatprep.subr.bf16.mxu1 %v1989_v50 }
 0x128   : > { %v568_v6 = vpack.c.bf16 %v472_v5, %v469_v2 }
 0x129   : > { %1715 = vmatmul.mubr.msk.bf16.vlgmr.msra.gmra.mrb[4].mxu1 %vm354_vm0, %v2208_v60 }
 0x12a   : > { %1719 = vmatpush3.bf16.msra.mxu1 %v568_v6  ;;  %1722 = vmatprep.mubr.msk.bf16.mxu1 %vm1990_vm1, %v1989_v50 }
 0x12b   : > { %1720 = vmatprep.subr.bf16.mxu1 %v1989_v50 }
 0x12c   : > { %v1684_v7 = vpop.f32.mrb[12].mxu0 }
 0x12d   : > { %v485_v8 = vpop.f32.mrb[13].mxu0 }
 0x12e   : > { %v1685_v9 = vpop.f32.mrb[14].mxu0  ;;  %1721 = vmatpush3.bf16.msra.mxu1 %v569_v4 }
 0x12f   : > { %v571_v10 = vpack.c.bf16 %v1685_v9, %v1684_v7  ;;  %v488_v11 = vpop.f32.mrb[15].mxu0  ;;  %1726 = vmatprep.subr.bf16.mxu1 %v1989_v50 }
 0x130   : > { %v570_v12 = vpack.c.bf16 %v488_v11, %v485_v8 }
 0x131   : > { %1723 = vmatmul.mubr.msk.bf16.vlgmr.msra.gmra.mrb[8].mxu1 %vm354_vm0, %v2208_v60 }
 0x132   : > { %1727 = vmatpush3.bf16.msra.mxu1 %v570_v12  ;;  %1730 = vmatprep.mubr.msk.bf16.mxu1 %vm1990_vm1, %v1989_v50 }
 0x133   : > { %1728 = vmatprep.subr.bf16.mxu1 %v1989_v50 }
 0x134   : > { %v1688_v13 = vpop.f32.mrb[16].mxu0 }
 0x135   : > { %v501_v14 = vpop.f32.mrb[17].mxu0 }
 0x136   : > { %v1689_v15 = vpop.f32.mrb[18].mxu0  ;;  %1729 = vmatpush3.bf16.msra.mxu1 %v571_v10 }
 0x137   : > { %v573_v16 = vpack.c.bf16 %v1689_v15, %v1688_v13  ;;  %v504_v17 = vpop.f32.mrb[19].mxu0  ;;  %1734 = vmatprep.subr.bf16.mxu1 %v1989_v50 }
 0x138   : > { %v572_v18 = vpack.c.bf16 %v504_v17, %v501_v14 }
 0x139   : > { %1731 = vmatmul.mubr.msk.bf16.vlgmr.msra.gmra.mrb[12].mxu1 %vm354_vm0, %v2208_v60 }
 0x13a   : > { %1735 = vmatpush3.bf16.msra.mxu1 %v572_v18  ;;  %1738 = vmatprep.mubr.msk.bf16.mxu1 %vm1990_vm1, %v1989_v50 }
 0x13b   : > { %1736 = vmatprep.subr.bf16.mxu1 %v1989_v50 }
 0x13c   : > { %v1692_v19 = vpop.f32.mrb[20].mxu0 }
 0x13d   : > { %v517_v20 = vpop.f32.mrb[21].mxu0 }
 0x13e   : > { %v1693_v21 = vpop.f32.mrb[22].mxu0  ;;  %1737 = vmatpush3.bf16.msra.mxu1 %v573_v16 }
 0x13f   : > { %v575_v22 = vpack.c.bf16 %v1693_v21, %v1692_v19  ;;  %v520_v23 = vpop.f32.mrb[23].mxu0  ;;  %1742 = vmatprep.subr.bf16.mxu1 %v1989_v50 }
 0x140   : > { %v574_v24 = vpack.c.bf16 %v520_v23, %v517_v20  ;;  %v935_v20 = vld [vmem:[%s2408_s4] sm:$0xf] }
 0x141   : > { %1739 = vmatmul.mubr.msk.bf16.vlgmr.msra.gmra.mrb[16].mxu1 %vm354_vm0, %v2208_v60 }
 0x142   : > { %1743 = vmatpush3.bf16.msra.mxu1 %v574_v24  ;;  %1746 = vmatprep.mubr.msk.bf16.mxu1 %vm1990_vm1, %v1989_v50 }
 0x143   : > { %1744 = vmatprep.subr.bf16.mxu1 %v1989_v50 }
 0x144   : > { %v1696_v25 = vpop.f32.mrb[24].mxu0 }
 0x145   : > { %v533_v26 = vpop.f32.mrb[25].mxu0 }
 0x146   : > { %1745 = vmatpush3.bf16.msra.mxu1 %v575_v22  ;;  %v1697_v27 = vpop.f32.mrb[26].mxu0 }
 0x147   : > { %v577_v28 = vpack.c.bf16 %v1697_v27, %v1696_v25  ;;  %v536_v29 = vpop.f32.mrb[27].mxu0  ;;  %1750 = vmatprep.subr.bf16.mxu1 %v1989_v50 }
 0x148   : > { %v576_v30 = vpack.c.bf16 %v536_v29, %v533_v26 }
 0x149   : > { %1747 = vmatmul.mubr.msk.bf16.vlgmr.msra.gmra.mrb[20].mxu1 %vm354_vm0, %v2208_v60 }
 0x14a   : > { %1751 = vmatpush3.bf16.msra.mxu1 %v576_v30  ;;  %1754 = vmatprep.mubr.msk.bf16.mxu1 %vm1990_vm1, %v1989_v50 }
 0x14b   : > { %1752 = vmatprep.subr.bf16.mxu1 %v1989_v50 }
 0x14c   : > { %v1700_v31 = vpop.f32.mrb[28].mxu0 }
 0x14d   : > { %v549_v32 = vpop.f32.mrb[29].mxu0 }
 0x14e   : > { %v1701_v33 = vpop.f32.mrb[30].mxu0  ;;  %1753 = vmatpush3.bf16.msra.mxu1 %v577_v28 }
 0x14f   : > { %v579_v34 = vpack.c.bf16 %v1701_v33, %v1700_v31  ;;  %v552_v35 = vpop.f32.mrb[31].mxu0  ;;  %1758 = vmatprep.subr.bf16.mxu1 %v1989_v50 }
 0x150   : > { %v578_v36 = vpack.c.bf16 %v552_v35, %v549_v32 }
 0x151   : > { %1755 = vmatmul.mubr.msk.bf16.vlgmr.msra.gmra.mrb[24].mxu1 %vm354_vm0, %v2208_v60 }
 0x152   : > { %1759 = vmatpush3.bf16.msra.mxu1 %v578_v36  ;;  %1762 = vmatprep.mubr.msk.bf16.mxu1 %vm1990_vm1, %v1989_v50 }
 0x153   : > { %1760 = vmatprep.subr.bf16.mxu1 %v1989_v50 }
 0x156   : > { %1761 = vmatpush3.bf16.msra.mxu1 %v579_v34 }
 0x157   : > { %1784 = vmatprep.subr.bf16.mxu1 %v1989_v50 }
 0x159   : > { %1763 = vmatmul.mubr.msk.bf16.vlgmr.msra.gmra.mrb[28].mxu1 %vm354_vm0, %v2208_v60 }
 0x15a   : > { %1786 = vmatprep.mubr.msk.bf16.mxu1 %vm1990_vm1, %v1989_v50 }
 0x1f4   : > { %v622_v37 = vpop.f32.mrb[0].mxu1 }
 0x1f5   : > { %917 = vst.msk [vmem:[%s2258_s26] sm:$0xff] %vm916_vm2, %v622_v37  ;;  %v1708_v38 = vpop.f32.mrb[1].mxu1 }
 0x1f6   : > { %v625_v39 = vpop.f32.mrb[2].mxu1 }
 0x1f7   : > { %918 = vst.msk [vmem:[%s2258_s26 + $0x8] sm:$0xff] %vm916_vm2, %v625_v39  ;;  %v936_v40 = vpack.c.bf16 %v625_v39, %v622_v37  ;;  %v1709_v41 = vpop.f32.mrb[3].mxu1 }
 0x1f9   : > { %1768 = vmatprep.mubr.msk.bf16.mxu0 %vm916_vm2, %v936_v40 }
 0x1fc   : > { %v663_v42 = vpop.f32.mrb[4].mxu1 }
 0x1fd   : > { %919 = vst.msk [vmem:[%s2258_s26 + $0x10] sm:$0xff] %vm916_vm2, %v663_v42  ;;  %v1716_v43 = vpop.f32.mrb[5].mxu1 }
 0x1fe   : > { %v666_v44 = vpop.f32.mrb[6].mxu1 }
 0x1ff   : > { %920 = vst.msk [vmem:[%s2258_s26 + $0x18] sm:$0xff] %vm916_vm2, %v666_v44  ;;  %v937_v45 = vpack.c.bf16 %v666_v44, %v663_v42  ;;  %v1717_v46 = vpop.f32.mrb[7].mxu1 }
 0x201   : > { %1769 = vmatmul.mubr.msk.bf16.vlgmr.msra.gmra.mrb[32].mxu0 %vm916_vm2, %v937_v45 }
 0x204   : > { %v704_v47 = vpop.f32.mrb[8].mxu1 }
 0x205   : > { %921 = vst.msk [vmem:[%s2258_s26 + $0x20] sm:$0xff] %vm916_vm2, %v704_v47  ;;  %v1724_v48 = vpop.f32.mrb[9].mxu1 }
 0x206   : > { %v707_v49 = vpop.f32.mrb[10].mxu1 }
 0x207   : > { %922 = vst.msk [vmem:[%s2258_s26 + $0x28] sm:$0xff] %vm916_vm2, %v707_v49  ;;  %v938_v51 = vpack.c.bf16 %v707_v49, %v704_v47  ;;  %v1725_v52 = vpop.f32.mrb[11].mxu1 }
 0x209   : > { %1772 = vmatprep.mubr.msk.bf16.mxu0 %vm916_vm2, %v938_v51 }
 0x20c   : > { %v745_v53 = vpop.f32.mrb[12].mxu1 }
 0x20d   : > { %923 = vst.msk [vmem:[%s2258_s26 + $0x30] sm:$0xff] %vm916_vm2, %v745_v53  ;;  %v1732_v54 = vpop.f32.mrb[13].mxu1 }
 0x20e   : > { %v748_v55 = vpop.f32.mrb[14].mxu1 }
 0x20f   : > { %924 = vst.msk [vmem:[%s2258_s26 + $0x38] sm:$0xff] %vm916_vm2, %v748_v55  ;;  %v939_v56 = vpack.c.bf16 %v748_v55, %v745_v53  ;;  %v1733_v57 = vpop.f32.mrb[15].mxu1 }
 0x211   : > { %1773 = vmatmul.mubr.msk.bf16.gmra.mrb[36].mxu0 %vm916_vm2, %v939_v56 }
 0x214   : > { %v786_v58 = vpop.f32.mrb[16].mxu1 }
 0x215   : > { %925 = vst.msk [vmem:[%s2258_s26 + $0x40] sm:$0xff] %vm916_vm2, %v786_v58  ;;  %v1740_v59 = vpop.f32.mrb[17].mxu1 }
 0x216   : > { %v789_v60 = vpop.f32.mrb[18].mxu1 }
 0x217   : > { %926 = vst.msk [vmem:[%s2258_s26 + $0x48] sm:$0xff] %vm916_vm2, %v789_v60  ;;  %v940_v61 = vpack.c.bf16 %v789_v60, %v786_v58  ;;  %v1741_v62 = vpop.f32.mrb[19].mxu1 }
 0x219   : > { %1776 = vmatprep.mubr.msk.bf16.mxu0 %vm916_vm2, %v940_v61 }
 0x21c   : > { %v827_v63 = vpop.f32.mrb[20].mxu1 }
 0x21d   : > { %927 = vst.msk [vmem:[%s2258_s26 + $0x50] sm:$0xff] %vm916_vm2, %v827_v63  ;;  %v1748_v0 = vpop.f32.mrb[21].mxu1 }
 0x21e   : > { %v830_v1 = vpop.f32.mrb[22].mxu1 }
 0x21f   : > { %928 = vst.msk [vmem:[%s2258_s26 + $0x58] sm:$0xff] %vm916_vm2, %v830_v1  ;;  %v941_v2 = vpack.c.bf16 %v830_v1, %v827_v63  ;;  %v1749_v3 = vpop.f32.mrb[23].mxu1 }
 0x221   : > { %1777 = vmatmul.mubr.msk.bf16.gmra.mrb[40].mxu0 %vm916_vm2, %v941_v2 }
 0x224   : > { %v868_v4 = vpop.f32.mrb[24].mxu1 }
 0x225   : > { %929 = vst.msk [vmem:[%s2258_s26 + $0x60] sm:$0xff] %vm916_vm2, %v868_v4  ;;  %v1756_v5 = vpop.f32.mrb[25].mxu1 }
 0x226   : > { %v871_v6 = vpop.f32.mrb[26].mxu1 }
 0x227   : > { %930 = vst.msk [vmem:[%s2258_s26 + $0x68] sm:$0xff] %vm916_vm2, %v871_v6  ;;  %v942_v7 = vpack.c.bf16 %v871_v6, %v868_v4  ;;  %v1757_v8 = vpop.f32.mrb[27].mxu1 }
 0x229   : > { %1780 = vmatprep.mubr.msk.bf16.mxu0 %vm916_vm2, %v942_v7 }
 0x22c   : > { %v909_v9 = vpop.f32.mrb[28].mxu1 }
 0x22d   : > { %931 = vst.msk [vmem:[%s2258_s26 + $0x70] sm:$0xff] %vm916_vm2, %v909_v9  ;;  %v1764_v10 = vpop.f32.mrb[29].mxu1 }
 0x22e   : > { %v912_v11 = vpop.f32.mrb[30].mxu1 }
 0x22f   : > { %932 = vst.msk [vmem:[%s2258_s26 + $0x78] sm:$0xff] %vm916_vm2, %v912_v11  ;;  %v943_v12 = vpack.c.bf16 %v912_v11, %v909_v9  ;;  %v1765_v13 = vpop.f32.mrb[31].mxu1 }
 0x231   : > { %1781 = vmatmul.mubr.msk.bf16.gmra.mrb[44].mxu0 %vm916_vm2, %v943_v12 }
 0x232   : > { %1810 = vmatprep.mubr.msk.bf16.mxu0 %vm1990_vm1, %v1989_v50 }
 0x2d4   : > { %v1770_v14 = vpop.f32.mrb[32].mxu0 }
 0x2d5   : > { %v1008_v15 = vpop.f32.mrb[33].mxu0 }
 0x2d6   : > { %v1771_v16 = vpop.f32.mrb[34].mxu0 }
 0x2d7   : > { %v1072_v17 = vpack.c.bf16 %v1771_v16, %v1770_v14  ;;  %v1011_v18 = vpop.f32.mrb[35].mxu0 }
 0x2d8   : > { %v1071_v19 = vpack.c.bf16 %v1011_v18, %v1008_v15 }
 0x2da   : > { %1785 = vmatpush3.bf16.msra.mxu1 %v1071_v19 }
 0x2db   : > { %1790 = vmatprep.subr.bf16.mxu1 %v1989_v50 }
 0x2dd   : > { %1787 = vmatmul.mubr.msk.bf16.vlgmr.msra.gmra.mrb[32].mxu1 %vm916_vm2, %v935_v20 }
 0x2de   : > { %1791 = vmatpush3.bf16.msra.mxu1 %v1072_v17  ;;  %1792 = vmatprep.mubr.msk.bf16.mxu1 %vm1990_vm1, %v1989_v50 }
 0x2df   : > { %1796 = vmatprep.subr.bf16.mxu1 %v1989_v50 }
 0x2e4   : > { %v1774_v21 = vpop.f32.mrb[36].mxu0 }
 0x2e5   : > { %v1024_v22 = vpop.f32.mrb[37].mxu0  ;;  %1793 = vmatmul.mubr.msk.bf16.vlgmr.msra.gmra.mrb[36].mxu1 %vm916_vm2, %v935_v20 }
 0x2e6   : > { %v1775_v23 = vpop.f32.mrb[38].mxu0  ;;  %1798 = vmatprep.mubr.msk.bf16.mxu1 %vm1990_vm1, %v1989_v50 }
 0x2e7   : > { %v1074_v24 = vpack.c.bf16 %v1775_v23, %v1774_v21  ;;  %v1027_v25 = vpop.f32.mrb[39].mxu0 }
 0x2e8   : > { %v1073_v26 = vpack.c.bf16 %v1027_v25, %v1024_v22 }
 0x2ea   : > { %1797 = vmatpush3.bf16.msra.mxu1 %v1073_v26 }
 0x2eb   : > { %1802 = vmatprep.subr.bf16.mxu1 %v1989_v50 }
 0x2ed   : > { %1799 = vmatmul.mubr.msk.bf16.vlgmr.msra.gmra.mrb[40].mxu1 %vm916_vm2, %v935_v20 }
 0x2ee   : > { %1803 = vmatpush3.bf16.msra.mxu1 %v1074_v24  ;;  %1804 = vmatprep.mubr.msk.bf16.mxu1 %vm1990_vm1, %v1989_v50 }
 0x2ef   : > { %1814 = vmatprep.subr.bf16.mxu1 %v1989_v50 }
 0x2f4   : > { %v1778_v27 = vpop.f32.mrb[40].mxu0 }
 0x2f5   : > { %v1040_v28 = vpop.f32.mrb[41].mxu0  ;;  %1805 = vmatmul.mubr.msk.bf16.vlgmr.msra.gmra.mrb[44].mxu1 %vm916_vm2, %v935_v20 }
 0x2f6   : > { %v1779_v29 = vpop.f32.mrb[42].mxu0  ;;  %1816 = vmatprep.mubr.msk.bf16.mxu1 %vm1990_vm1, %v1989_v50 }
 0x2f7   : > { %v1076_v30 = vpack.c.bf16 %v1779_v29, %v1778_v27  ;;  %v1043_v31 = vpop.f32.mrb[43].mxu0 }
 0x2f8   : > { %v1075_v32 = vpack.c.bf16 %v1043_v31, %v1040_v28 }
 0x2f9   : > { %1815 = vmatpush3.bf16.msra.mxu1 %v1076_v30 }
 0x2fa   : > { %1809 = vmatpush3.bf16.msra.mxu0 %v1075_v32  ;;  %1826 = vmatprep.subr.bf16.mxu1 %v1989_v50 }
 0x2fb   : > { %1820 = vmatprep.subr.bf16.mxu0 %v1989_v50 }
 0x2fd   : > { %1811 = vmatmul.mubr.msk.bf16.vlgmr.msra.gmra.mrb[48].mxu0 %vm916_vm2, %v935_v20  ;;  %1817 = vmatmul.mubr.msk.bf16.vlgmr.msra.gmra.mrb[48].mxu1 %vm916_vm2, %v935_v20 }
 0x2fe   : > { %1822 = vmatprep.mubr.msk.bf16.mxu0 %vm1990_vm1, %v1989_v50  ;;  %1828 = vmatprep.mubr.msk.bf16.mxu1 %vm1990_vm1, %v1989_v50 }
 0x304   : > { %v1782_v33 = vpop.f32.mrb[44].mxu0 }
 0x305   : > { %v1056_v34 = vpop.f32.mrb[45].mxu0 }
 0x306   : > { %v1783_v35 = vpop.f32.mrb[46].mxu0 }
 0x307   : > { %v1078_v36 = vpack.c.bf16 %v1783_v35, %v1782_v33  ;;  %v1059_v37 = vpop.f32.mrb[47].mxu0 }
 0x308   : > { %v1077_v38 = vpack.c.bf16 %v1059_v37, %v1056_v34 }
 0x309   : > { %1827 = vmatpush3.bf16.msra.mxu1 %v1078_v36 }
 0x30a   : > { %1821 = vmatpush3.bf16.msra.mxu0 %v1077_v38 }
 0x30c   : > { %1829 = vmatmul.mubr.msk.bf16.vlgmr.msra.gmra.mrb[52].mxu1 %vm916_vm2, %v935_v20 }
 0x30d   : > { %1823 = vmatmul.mubr.msk.bf16.vlgmr.msra.gmra.mrb[52].mxu0 %vm916_vm2, %v935_v20 }
 0x30e   : > { %1931 = shalt.err (!%p1928_p2)
}
 0x30f   : > { %s1932_s17 = scalar_lea.hbm %s2336_s19, 2048  ;;  %s1936_s7 = scalar_lea.hbm %s2409_s5, 4096 }
 0x310   : > { %p1933_p4 = scmp.ne.s32.totalorder %s2336_s19, %s1932_s17  ;;  %p1937_p9 = scmp.lt.u32.totalorder %s2336_s19, %s2409_s5 }
 0x311   : > { %p1938_p1 = scmp.lt.u32.totalorder %s1936_s7, %s1932_s17  ;;  %p1940_p6 = scmp.lt.u32.totalorder %s1932_s17, %s2336_s19 }
 0x312   : > { %p1934_p5 = pnand %p1933_p4, %p2417_p11 }
 0x313   : > { %p1939_p3 = por %p1938_p1, %p1937_p9 }
 0x314   : > { %p1935_p7 = pneg %p1934_p5 }
 0x315   : > { %p1941_p12 = por %p1940_p6, %p1939_p3 }
 0x317   : > { %p1942_p13 = pnand %p1941_p12, %p1935_p7 }
 0x319   : > { %1945 = shalt.err (!%p1942_p13)
}
 0x31a   : > { %s1992_s18 = smov 128   ;;  %s1993_s8 = smov 8   ;;  %vm1402_vm3 = vcmask 64512  }
 0x31b   : > { %1834 = dma.vmem_to_hbm [thread:$0]  (%p2417_p11), %s2338_s13, 2048, %s2336_s19, %s1412_s20, %s1992_s18, %s1992_s18, %s1993_s8  }
 0x31c   : > { %s1543_s11 = sshll.u32 %s2050_s25, 3 }
 0x31d   : > { %p282_p8 = scmp.lt.s32.totalorder %s1543_s11, 15 }
 0x31f   : > { %s2425_s11 = smov (!%p282_p8, %s1543_s11), 15 }
 0x320   : > { %s1544_s14 = sshll.u32 %s2425_s11, 3 }
 0x321   : > { %s2368_s17 = scalar_lea.vmem %s2410_s6, %s1544_s14 }
 0x3b0   : > { %v1116_v50 = vpop.f32.mrb[32].mxu1 }
 0x3b1   : > { %1403 = vst.msk [vmem:[%s2368_s17] sm:$0xff] %vm1402_vm3, %v1116_v50  ;;  %v1788_v39 = vpop.f32.mrb[33].mxu1 }
 0x3b2   : > { %v1119_v40 = vpop.f32.mrb[34].mxu1 }
 0x3b3   : > { %v1789_v41 = vpop.f32.mrb[35].mxu1 }
 0x3b8   : > { %v1156_v42 = vpop.f32.mrb[36].mxu1 }
 0x3b9   : > { %1404 = vst.msk [vmem:[%s2368_s17 + $0x8] sm:$0xff] %vm1402_vm3, %v1156_v42  ;;  %v1794_v43 = vpop.f32.mrb[37].mxu1 }
 0x3ba   : > { %v1159_v44 = vpop.f32.mrb[38].mxu1 }
 0x3bb   : > { %v1795_v45 = vpop.f32.mrb[39].mxu1 }
 0x3c0   : > { %v1196_v46 = vpop.f32.mrb[40].mxu1 }
 0x3c1   : > { %1405 = vst.msk [vmem:[%s2368_s17 + $0x10] sm:$0xff] %vm1402_vm3, %v1196_v46  ;;  %v1800_v47 = vpop.f32.mrb[41].mxu1 }
 0x3c2   : > { %v1199_v48 = vpop.f32.mrb[42].mxu1 }
 0x3c3   : > { %v1801_v49 = vpop.f32.mrb[43].mxu1 }
 0x3c8   : > { %v1236_v51 = vpop.f32.mrb[44].mxu1 }
 0x3c9   : > { %1406 = vst.msk [vmem:[%s2368_s17 + $0x18] sm:$0xff] %vm1402_vm3, %v1236_v51  ;;  %v1806_v52 = vpop.f32.mrb[45].mxu1 }
 0x3ca   : > { %v1239_v53 = vpop.f32.mrb[46].mxu1 }
 0x3cb   : > { %v1807_v54 = vpop.f32.mrb[47].mxu1 }
 0x3d0   : > { %v1276_v55 = vpop.f32.mrb[48].mxu0  ;;  %v1316_v56 = vpop.f32.mrb[48].mxu1 }
 0x3d1   : > { %1407 = vst.msk [vmem:[%s2368_s17 + $0x20] sm:$0xff] %vm1402_vm3, %v1276_v55  ;;  %1408 = vst.msk [vmem:[%s2368_s17 + $0x28] sm:$0xff] %vm1402_vm3, %v1316_v56  ;;  %v1812_v57 = vpop.f32.mrb[49].mxu0  ;;  %v1818_v58 = vpop.f32.mrb[49].mxu1 }
 0x3d2   : > { %v1279_v59 = vpop.f32.mrb[50].mxu0  ;;  %v1319_v60 = vpop.f32.mrb[50].mxu1 }
 0x3d3   : > { %v1813_v61 = vpop.f32.mrb[51].mxu0  ;;  %v1819_v62 = vpop.f32.mrb[51].mxu1 }
 0x3df   : > { %v1396_v63 = vpop.f32.mrb[52].mxu1 }
 0x3e0   : > { %v1356_v0 = vpop.f32.mrb[52].mxu0  ;;  %1410 = vst.msk [vmem:[%s2368_s17 + $0x38] sm:$0xff] %vm1402_vm3, %v1396_v63  ;;  %v1830_v1 = vpop.f32.mrb[53].mxu1 }
 0x3e1   : > { %1409 = vst.msk [vmem:[%s2368_s17 + $0x30] sm:$0xff] %vm1402_vm3, %v1356_v0  ;;  %v1824_v2 = vpop.f32.mrb[53].mxu0  ;;  %v1399_v3 = vpop.f32.mrb[54].mxu1 }
 0x3e2   : > { %v1359_v4 = vpop.f32.mrb[54].mxu0  ;;  %v1831_v5 = vpop.f32.mrb[55].mxu1 }
 0x3e3   : > { %v1825_v6 = vpop.f32.mrb[55].mxu0 }
 0x3e4 PF: > { %s1450_s25 = sand.u32 1, %s1972_s21   ;;  %p2418_p11 = scmp.ne.s32.totalorder %s2415_s10, 0 }
 0x3e5   : > { %p2419_p10 = scmp.ge.s32.totalorder %s1984_s24, 2  ;;  %s1451_s9 = scalar_lea.sflag [#allocation4], %s1450_s25 }
 0x3e7   : > { %p1841_p0 = pnand %p2419_p10, %p2418_p11 }
 0x3e9   : > { %1967 = dma.done.wait (!%p1841_p0), %s1451_s9, 2048  }
 0x3ea   : > { %1969 = vsyncadd (!%p1841_p0), %s1451_s9, 4294965248  ;;  %p20_p2 = scmp.ge.s32.totalorder %s2054_s27, 4   ;;  %s2420_s21 = smov %s1976_s22 }
 0x3eb   : > { %s2421_s22 = smov %s1980_s23  ;;  %s2422_s23 = smov %s2066_s30 }
 0x3ec   : > { %s2423_s24 = smov %s2054_s27  ;;  %22 = sbr.rel (!%p20_p2) target bundleno = 5 (0x5), region = 97 }
 0x3f3   :  { %1464 = vsyncpa [#allocation3], 1 }
 0x3f4   :  { %1466 = vsyncpa [#allocation3 + $0x1], 1 }
 0x3f5   :  { %1467 = vsyncpa [#allocation4], 1 }
 0x3f6   :  { %1469 = vsyncpa [#allocation4 + $0x1], 1 }

// kernel: tpu_custom_call.1
= control target key start
LH: loop header
LB: loop body
LE: loop exit
PB: predicated region body
PF: predicated region fallthrough
CT: control target
= control target key end

     0   :  { %12 = vsyncpa [#allocation3], 0  ;;  %s3015_s0 = inlined_call_operand.hbm [shape: f32[16,32,32], index: 0, kind: input, shape index: {}]   ;;  %s3016_s1 = inlined_call_operand.vmem [shape: bf16[32,16], index: 1, kind: input, shape index: {}]   ;;  %s3017_s2 = inlined_call_operand.vmem [shape: bf16[16,32], index: 2, kind: input, shape index: {}]   ;;  %s3018_s3 = inlined_call_operand.vmem [shape: bf16[16,8], index: 3, kind: input, shape index: {}]   ;;  %s3019_s4 = inlined_call_operand.vmem [shape: bf16[8,16], index: 4, kind: input, shape index: {}]   ;;  %s3020_s5 = inlined_call_operand.hbm [shape: f32[16,16,16], index: 5, kind: output, shape index: {0}]   ;;  %s3021_s6 = inlined_call_operand.vmem [shape: f32[16,8,8], index: 6, kind: output, shape index: {1}]  }
   0x1   :  { %14 = vsyncpa [#allocation3 + $0x1], 0 }
   0x2   :  { %15 = vsyncpa [#allocation4], 0 }
   0x3   :  { %17 = vsyncpa [#allocation4 + $0x1], 0  ;;  %s2570_s21 = smov 0   ;;  %s2572_s22 = smov 0  }
   0x4   :  { %s2574_s23 = smov 0   ;;  %s2576_s24 = smov 0  }
   0x5 LB: > { %s2591_s25 = sadd.s32 4294967295, %s2525_s24   ;;  %s1995_s26 = sadd.s32 4294967294, %s2525_s24   ;;  %s2525_s24 = sphi %s2576_s24, %s3034_s24   ;;  %s2521_s23 = sphi %s2574_s23, %s3033_s23   ;;  %s2517_s22 = sphi %s2572_s22, %s3032_s22   ;;  %s2513_s21 = sphi %s2570_s21, %s3031_s21  }
   0x6   : > { %s2595_s27 = sadd.s32 1, %s2525_s24   ;;  %s30_s28 = sadd.s32 1, %s2521_s23 }
   0x7   : > { %s27_s29 = ssub.s32 %s2525_s24, %s2595_s27  ;;  %p37_p0 = scmp.ne.s32.totalorder %s2521_s23, %s2517_s22 }
   0x8   : > { %p28_p1 = scmp.eq.s32.totalorder %s27_s29, 0  ;;  %p38_p2 = scmp.eq.s32.totalorder %s2525_s24, 0 }
   0x9   : > { %p43_p3 = scmp.ne.s32.totalorder %s2517_s22, %s2513_s21  ;;  %p44_p4 = scmp.eq.s32.totalorder %s2591_s25, 0 }
   0xa   : > { %s2607_s30 = scalar_select %p28_p1, %s2521_s23, %s30_s28  }
   0xb   : > { %p2609_p5 = por %p38_p2, %p37_p0  ;;  %p2613_p6 = por %p44_p4, %p43_p3 }
   0xc   : > { %p151_p7 = scmp.eq.s32.totalorder %s2591_s25, 1  ;;  %p157_p8 = scmp.eq.s32.totalorder %s1995_s26, 1 }
   0xd   : > { %p2385_p10 = scmp.lt.s32.totalorder %s2525_s24, 2  ;;  %s215_s11 = sand.u32 1, %s2521_s23  }
   0xe   : > { %p2620_p11 = por %p151_p7, %p37_p0  ;;  %p2624_p12 = por %p157_p8, %p43_p3 }
   0xf   : > { %s2058_s12 = sshll.u32 %s2525_s24, 12  ;;  %s1998_s13 = sshll.u32 %s215_s11, 8 }
  0x10   : > { %s3025_s9 = scalar_select %p2620_p11, 1, 0 }
  0x11   : > { %s3026_s10 = scalar_select %p2624_p12, 1, 0 }
  0x12   : > { %s2633_s16 = scalar_lea.hbm %s3015_s0, %s2058_s12  ;;  %s219_s17 = scalar_lea.vmem [#allocation2], %s1998_s13 }
  0x13   : > { %s227_s18 = sshll.u32 %s219_s17, 4  ;;  %p2637_p13 = pnand %p2385_p10, %p2609_p5  ;;  %s2641_s18 = int_to_ptr.vmem [resolvable:$true] %s227_s18 }
  0x14   : > { %s2643_s20 = scalar_lea.sflag [#allocation3], %s215_s11  ;;  %s2429_s26 = scalar_lea.hbm %s2633_s16, 4096 }
  0x15   : > { %p2430_p0 = scmp.ne.s32.totalorder %s2633_s16, %s2429_s26  ;;  %p2431_p1 = pneg %p2637_p13 }
  0x16   : > { %s2434_s7 = scalar_lea.hbm %s3015_s0, 8192  ;;  %p2435_p4 = scmp.lt.u32.totalorder %s2633_s16, %s3015_s0 }
  0x17   : > { %p2432_p2 = pnand %p2431_p1, %p2430_p0  ;;  %p2436_p5 = scmp.lt.u32.totalorder %s2434_s7, %s2429_s26 }
  0x18   : > { %p2438_p8 = scmp.lt.u32.totalorder %s2429_s26, %s2633_s16 }
  0x19   : > { %p2433_p3 = pneg %p2432_p2  ;;  %p2437_p7 = por %p2436_p5, %p2435_p4 }
  0x1b   : > { %p2439_p10 = por %p2438_p8, %p2437_p7 }
  0x1d   : > { %p2440_p9 = pnand %p2439_p10, %p2433_p3 }
  0x1f   : > { %2443 = shalt.err (!%p2440_p9)
}
  0x20   : > { %s2444_s11 = scalar_lea.vmem %s2641_s18, 4096  ;;  %s2527_s14 = smov [#allocation2]  }
  0x21   : > { %p2445_p0 = scmp.ne.s32.totalorder %s2641_s18, %s2444_s11  ;;  %s2449_s15 = sshll.u32 %s2527_s14, 4  ;;  %s2450_s15 = int_to_ptr.vmem [resolvable:$false] %s2449_s15 }
  0x22   : > { %s2451_s17 = scalar_lea.vmem %s2450_s15, 8192  ;;  %p2452_p11 = scmp.lt.s32.totalorder %s2641_s18, %s2450_s15 }
  0x23   : > { %p2447_p2 = pnand %p2445_p0, %p2431_p1  ;;  %p2453_p4 = scmp.lt.s32.totalorder %s2451_s17, %s2444_s11 }
  0x25   : > { %p2448_p12 = pneg %p2447_p2  ;;  %p2454_p5 = por %p2453_p4, %p2452_p11 }
  0x27   : > { %p2455_p7 = pnand %p2454_p5, %p2448_p12 }
  0x29   : > { %2458 = shalt.err (!%p2455_p7)
}
  0x2a   : > { %s2528_s26 = smov 128   ;;  %s2529_s28 = smov 8  }
  0x2b   : > { %2380 = dma.hbm_to_vmem [thread:$0]  (!%p2637_p13), %s2633_s16, 4096, %s2641_s18, %s2643_s20, %s2528_s26, %s2528_s26, %s2529_s28  }
  0x2c   : > { %p2002_p9 = scmp.ge.s32.totalorder %s2525_s24, 1  ;;  %p235_p1 = scmp.lt.s32.totalorder %s2525_s24, 3 }
  0x2e   : > { %p236_p3 = pnand %p2002_p9, %p235_p1 }
  0x2f   : > { %s2674_s29 = sand.u32 (!%p236_p3), 1, %s2517_s22  }
  0x30   : > { %239 = sbr.rel (%p236_p3) target bundleno = 963 (0x3c3), region = 40  ;;  %s2003_s7 = sshll.u32 (!%p236_p3), %s2674_s29, 8 }
  0x31   : > { %s242_s12 = scalar_lea.sflag (!%p236_p3), [#allocation3], %s2674_s29  ;;  %s2678_s13 = scalar_lea.vmem (!%p236_p3), [#allocation2], %s2003_s7 }
  0x37   : > { %2504 = dma.done.wait (%p2613_p6), %s242_s12, 4096  }
  0x38   : > { %2506 = vsyncadd (%p2613_p6), %s242_s12, 4294963200  ;;  %v2687_v0 = vld [vmem:[%s3016_s1] sm:$0xff]   ;;  %v2692_v1 = vld [vmem:[%s3016_s1 + $0x8] sm:$0xff]   ;;  %vm354_vm0 = vcmask 261120   ;;  %v2530_v50 = vmov 0.0   ;;  %vm2531_vm1 = vmmov 0  }
  0x39   : > { %2149 = vmatprep.subr.bf16.mxu0 %v2687_v0  ;;  %2157 = vmatprep.subr.bf16.mxu1 %v2687_v0  ;;  %v288_v2 = vld [vmem:[%s2678_s13] sm:$0xff]  ;;  %v289_v3 = vld [vmem:[%s2678_s13 + $0x8] sm:$0xff]  ;;  %v290_v7 = vld [vmem:[%s2678_s13 + $0x10] sm:$0xff]  ;;  %s2004_s17 = sshll.u32 %s2674_s29, 7  ;;  %vm1147_vm2 = vcmask 130048   ;;  %s2060_s12 = sshll.u32 %s2591_s25, 11 }
  0x3a   : > { %v292_v4 = vld [vmem:[%s2678_s13 + $0x20] sm:$0xff]  ;;  %2150 = vmatpush3.bf16.msra.mxu0 %v2687_v0  ;;  %2158 = vmatpush3.bf16.msra.mxu1 %v2687_v0  ;;  %v326_v5 = vpack.c.bf16 %v289_v3, %v288_v2  ;;  %v293_v6 = vld [vmem:[%s2678_s13 + $0x28] sm:$0xff]  ;;  %v291_v8 = vld [vmem:[%s2678_s13 + $0x18] sm:$0xff]  ;;  %s2843_s26 = scalar_lea.vmem [#allocation5], %s2004_s17  ;;  %s2947_s19 = scalar_lea.hbm %s3020_s5, %s2060_s12 }
  0x3b   : > { %2151 = vmatprep.subr.bf16.mxu0 %v2692_v1  ;;  %2159 = vmatprep.subr.bf16.mxu1 %v2692_v1  ;;  %v328_v9 = vpack.c.bf16 %v293_v6, %v292_v4  ;;  %v294_v10 = vld [vmem:[%s2678_s13 + $0x30] sm:$0xff]  ;;  %v295_v11 = vld [vmem:[%s2678_s13 + $0x38] sm:$0xff]  ;;  %v296_v12 = vld [vmem:[%s2678_s13 + $0x40] sm:$0xff]  ;;  %v327_v13 = vpack.c.bf16 %v291_v8, %v290_v7  ;;  %s1874_s20 = scalar_lea.sflag [#allocation4], %s2674_s29  ;;  %p3028_p11 = scmp.ne.s32.totalorder %s3025_s9, 0 }
  0x3c   : > { %2153 = vmatprep.mubr.msk.bf16.mxu0 %vm354_vm0, %v326_v5  ;;  %v329_v14 = vpack.c.bf16 %v295_v11, %v294_v10  ;;  %v297_v15 = vld [vmem:[%s2678_s13 + $0x48] sm:$0xff]  ;;  %v300_v16 = vld [vmem:[%s2678_s13 + $0x60] sm:$0xff]  ;;  %v298_v20 = vld [vmem:[%s2678_s13 + $0x50] sm:$0xff]  ;;  %s2532_s11 = smov [#allocation5]  }
  0x3d   : > { %2161 = vmatprep.mubr.msk.bf16.mxu1 %vm354_vm0, %v328_v9  ;;  %v301_v17 = vld [vmem:[%s2678_s13 + $0x68] sm:$0xff]  ;;  %v330_v18 = vpack.c.bf16 %v297_v15, %v296_v12  ;;  %v299_v21 = vld [vmem:[%s2678_s13 + $0x58] sm:$0xff]  ;;  %v302_v22 = vld [vmem:[%s2678_s13 + $0x70] sm:$0xff]  ;;  %s2463_s14 = sshll.u32 %s2532_s11, 4  ;;  %s2464_s14 = int_to_ptr.vmem [resolvable:$false] %s2463_s14 }
  0x3e   : > { %2152 = vmatpush3.bf16.msra.mxu0 %v2692_v1  ;;  %2160 = vmatpush3.bf16.msra.mxu1 %v2692_v1  ;;  %v332_v19 = vpack.c.bf16 %v301_v17, %v300_v16  ;;  %v303_v23 = vld [vmem:[%s2678_s13 + $0x78] sm:$0xff]  ;;  %v304_v24 = vld [vmem:[%s2678_s13 + $0x80] sm:$0xff]  ;;  %v331_v25 = vpack.c.bf16 %v299_v21, %v298_v20  ;;  %v305_v27 = vld [vmem:[%s2678_s13 + $0x88] sm:$0xff]  ;;  %s2465_s15 = scalar_lea.vmem %s2464_s14, 4096 }
  0x3f   : > { %2165 = vmatprep.subr.bf16.mxu0 %v2687_v0  ;;  %2173 = vmatprep.subr.bf16.mxu1 %v2687_v0  ;;  %v333_v26 = vpack.c.bf16 %v303_v23, %v302_v22  ;;  %v308_v28 = vld [vmem:[%s2678_s13 + $0xa0] sm:$0xff]  ;;  %v309_v29 = vld [vmem:[%s2678_s13 + $0xa8] sm:$0xff]  ;;  %v334_v30 = vpack.c.bf16 %v305_v27, %v304_v24  ;;  %v306_v32 = vld [vmem:[%s2678_s13 + $0x90] sm:$0xff] }
  0x40   : > { %v336_v31 = vpack.c.bf16 %v309_v29, %v308_v28  ;;  %v307_v33 = vld [vmem:[%s2678_s13 + $0x98] sm:$0xff]  ;;  %v310_v34 = vld [vmem:[%s2678_s13 + $0xb0] sm:$0xff]  ;;  %v312_v36 = vld [vmem:[%s2678_s13 + $0xc0] sm:$0xff] }
  0x41   : > { %2154 = vmatmul.mubr.msk.bf16.vlgmr.msra.gmra.mrb[0].mxu0 %vm354_vm0, %v327_v13  ;;  %2162 = vmatmul.mubr.msk.bf16.vlgmr.msra.gmra.mrb[0].mxu1 %vm354_vm0, %v329_v14  ;;  %v311_v35 = vld [vmem:[%s2678_s13 + $0xb8] sm:$0xff]  ;;  %v335_v37 = vpack.c.bf16 %v307_v33, %v306_v32  ;;  %v313_v39 = vld [vmem:[%s2678_s13 + $0xc8] sm:$0xff]  ;;  %v316_v40 = vld [vmem:[%s2678_s13 + $0xe0] sm:$0xff] }
  0x42   : > { %2166 = vmatpush3.bf16.msra.mxu0 %v2687_v0  ;;  %2174 = vmatpush3.bf16.msra.mxu1 %v2687_v0  ;;  %v337_v38 = vpack.c.bf16 %v311_v35, %v310_v34  ;;  %v317_v41 = vld [vmem:[%s2678_s13 + $0xe8] sm:$0xff]  ;;  %v338_v42 = vpack.c.bf16 %v313_v39, %v312_v36  ;;  %v314_v44 = vld [vmem:[%s2678_s13 + $0xd0] sm:$0xff]  ;;  %v315_v45 = vld [vmem:[%s2678_s13 + $0xd8] sm:$0xff] }
  0x43   : > { %2167 = vmatprep.subr.bf16.mxu0 %v2692_v1  ;;  %2175 = vmatprep.subr.bf16.mxu1 %v2692_v1  ;;  %v340_v43 = vpack.c.bf16 %v317_v41, %v316_v40  ;;  %v318_v46 = vld [vmem:[%s2678_s13 + $0xf0] sm:$0xff]  ;;  %v319_v47 = vld [vmem:[%s2678_s13 + $0xf8] sm:$0xff]  ;;  %v339_v48 = vpack.c.bf16 %v315_v45, %v314_v44  ;;  %v2785_v3 = vld [vmem:[%s3017_s2] sm:$0xff]   ;;  %s1893_s13 = sshll.u32 %s2843_s26, 4  ;;  %s2949_s13 = int_to_ptr.vmem [resolvable:$true] %s1893_s13 }
  0x44   : > { %2169 = vmatprep.mubr.msk.bf16.mxu0 %vm354_vm0, %v330_v18  ;;  %2177 = vmatprep.mubr.msk.bf16.mxu1 %vm354_vm0, %v332_v19  ;;  %v341_v49 = vpack.c.bf16 %v319_v47, %v318_v46  ;;  %v2836_v36 = vld [vmem:[%s3018_s3] sm:$0xff]   ;;  %s2459_s8 = scalar_lea.vmem %s2949_s13, 2048  ;;  %p2466_p8 = scmp.lt.s32.totalorder %s2949_s13, %s2464_s14 }
  0x45   : > { %p2460_p6 = scmp.ne.s32.totalorder %s2949_s13, %s2459_s8  ;;  %p2467_p10 = scmp.lt.s32.totalorder %s2465_s15, %s2459_s8 }
  0x46   : > { %2168 = vmatpush3.bf16.msra.mxu0 %v2692_v1  ;;  %2176 = vmatpush3.bf16.msra.mxu1 %v2692_v1 }
  0x47   : > { %2181 = vmatprep.subr.bf16.mxu0 %v2687_v0  ;;  %2189 = vmatprep.subr.bf16.mxu1 %v2687_v0  ;;  %p2461_p12 = pnand %p2460_p6, %p3028_p11  ;;  %p2468_p0 = por %p2467_p10, %p2466_p8 }
  0x49   : > { %2170 = vmatmul.mubr.msk.bf16.vlgmr.msra.gmra.mrb[4].mxu0 %vm354_vm0, %v331_v25  ;;  %2178 = vmatmul.mubr.msk.bf16.vlgmr.msra.gmra.mrb[4].mxu1 %vm354_vm0, %v333_v26  ;;  %p2462_p13 = pneg %p2461_p12 }
  0x4a   : > { %2182 = vmatpush3.bf16.msra.mxu0 %v2687_v0  ;;  %2190 = vmatpush3.bf16.msra.mxu1 %v2687_v0 }
  0x4b   : > { %2183 = vmatprep.subr.bf16.mxu0 %v2692_v1  ;;  %2191 = vmatprep.subr.bf16.mxu1 %v2692_v1  ;;  %p2469_p2 = pnand %p2468_p0, %p2462_p13 }
  0x4c   : > { %2185 = vmatprep.mubr.msk.bf16.mxu0 %vm354_vm0, %v334_v30  ;;  %2193 = vmatprep.mubr.msk.bf16.mxu1 %vm354_vm0, %v336_v31 }
  0x4e   : > { %2184 = vmatpush3.bf16.msra.mxu0 %v2692_v1  ;;  %2192 = vmatpush3.bf16.msra.mxu1 %v2692_v1 }
  0x4f   : > { %2197 = vmatprep.subr.bf16.mxu0 %v2687_v0  ;;  %2205 = vmatprep.subr.bf16.mxu1 %v2687_v0 }
  0x51   : > { %2186 = vmatmul.mubr.msk.bf16.vlgmr.msra.gmra.mrb[8].mxu0 %vm354_vm0, %v335_v37  ;;  %2194 = vmatmul.mubr.msk.bf16.vlgmr.msra.gmra.mrb[8].mxu1 %vm354_vm0, %v337_v38 }
  0x52   : > { %2198 = vmatpush3.bf16.msra.mxu0 %v2687_v0  ;;  %2206 = vmatpush3.bf16.msra.mxu1 %v2687_v0 }
  0x53   : > { %2199 = vmatprep.subr.bf16.mxu0 %v2692_v1  ;;  %2207 = vmatprep.subr.bf16.mxu1 %v2692_v1 }
  0x54   : > { %2201 = vmatprep.mubr.msk.bf16.mxu0 %vm354_vm0, %v338_v42  ;;  %2209 = vmatprep.mubr.msk.bf16.mxu1 %vm354_vm0, %v340_v43 }
  0x56   : > { %2200 = vmatpush3.bf16.msra.mxu0 %v2692_v1  ;;  %2208 = vmatpush3.bf16.msra.mxu1 %v2692_v1 }
  0x57   : > { %2213 = vmatprep.subr.bf16.mxu0 %v2530_v50  ;;  %2221 = vmatprep.subr.bf16.mxu1 %v2530_v50 }
  0x59   : > { %2202 = vmatmul.mubr.msk.bf16.vlgmr.msra.gmra.mrb[12].mxu0 %vm354_vm0, %v339_v48  ;;  %2210 = vmatmul.mubr.msk.bf16.vlgmr.msra.gmra.mrb[12].mxu1 %vm354_vm0, %v341_v49 }
  0x5a   : > { %2217 = vmatprep.mubr.msk.bf16.mxu0 %vm2531_vm1, %v2530_v50  ;;  %2225 = vmatprep.mubr.msk.bf16.mxu1 %vm2531_vm1, %v2530_v50 }
 0x114   : > { %v2155_v51 = vpop.f32.mrb[0].mxu0  ;;  %v2163_v52 = vpop.f32.mrb[0].mxu1 }
 0x115   : > { %v395_v53 = vpop.f32.mrb[1].mxu0  ;;  %v450_v54 = vpop.f32.mrb[1].mxu1 }
 0x116   : > { %v2156_v55 = vpop.f32.mrb[2].mxu0  ;;  %v2164_v56 = vpop.f32.mrb[2].mxu1 }
 0x117   : > { %v796_v57 = vpack.c.bf16 %v2156_v55, %v2155_v51  ;;  %v798_v58 = vpack.c.bf16 %v2164_v56, %v2163_v52  ;;  %v398_v59 = vpop.f32.mrb[3].mxu0  ;;  %v453_v60 = vpop.f32.mrb[3].mxu1 }
 0x118   : > { %v795_v61 = vpack.c.bf16 %v398_v59, %v395_v53  ;;  %v797_v62 = vpack.c.bf16 %v453_v60, %v450_v54 }
 0x11a   : > { %2214 = vmatpush3.bf16.msra.mxu0 %v795_v61  ;;  %2222 = vmatpush3.bf16.msra.mxu1 %v797_v62 }
 0x11b   : > { %2215 = vmatprep.subr.bf16.mxu0 %v2530_v50  ;;  %2223 = vmatprep.subr.bf16.mxu1 %v2530_v50 }
 0x11c   : > { %v2171_v63 = vpop.f32.mrb[4].mxu0  ;;  %v2179_v0 = vpop.f32.mrb[4].mxu1 }
 0x11d   : > { %v505_v1 = vpop.f32.mrb[5].mxu0  ;;  %v560_v2 = vpop.f32.mrb[5].mxu1 }
 0x11e   : > { %v2172_v4 = vpop.f32.mrb[6].mxu0  ;;  %v2180_v5 = vpop.f32.mrb[6].mxu1  ;;  %2216 = vmatpush3.bf16.msra.mxu0 %v796_v57  ;;  %2224 = vmatpush3.bf16.msra.mxu1 %v798_v58 }
 0x11f   : > { %v800_v6 = vpack.c.bf16 %v2172_v4, %v2171_v63  ;;  %v802_v7 = vpack.c.bf16 %v2180_v5, %v2179_v0  ;;  %v508_v8 = vpop.f32.mrb[7].mxu0  ;;  %v563_v9 = vpop.f32.mrb[7].mxu1  ;;  %2229 = vmatprep.subr.bf16.mxu0 %v2530_v50  ;;  %2237 = vmatprep.subr.bf16.mxu1 %v2530_v50 }
 0x120   : > { %v799_v10 = vpack.c.bf16 %v508_v8, %v505_v1  ;;  %v801_v11 = vpack.c.bf16 %v563_v9, %v560_v2 }
 0x121   : > { %2218 = vmatmul.mubr.msk.bf16.vlgmr.msra.gmra.mrb[16].mxu0 %vm354_vm0, %v2785_v3  ;;  %2226 = vmatmul.mubr.msk.bf16.vlgmr.msra.gmra.mrb[16].mxu1 %vm354_vm0, %v2785_v3 }
 0x122   : > { %2230 = vmatpush3.bf16.msra.mxu0 %v799_v10  ;;  %2238 = vmatpush3.bf16.msra.mxu1 %v801_v11 }
 0x123   : > { %2231 = vmatprep.subr.bf16.mxu0 %v2530_v50  ;;  %2239 = vmatprep.subr.bf16.mxu1 %v2530_v50 }
 0x124   : > { %v2187_v12 = vpop.f32.mrb[8].mxu0  ;;  %v2195_v13 = vpop.f32.mrb[8].mxu1  ;;  %2233 = vmatprep.mubr.msk.bf16.mxu0 %vm2531_vm1, %v2530_v50  ;;  %2241 = vmatprep.mubr.msk.bf16.mxu1 %vm2531_vm1, %v2530_v50 }
 0x125   : > { %v615_v14 = vpop.f32.mrb[9].mxu0  ;;  %v670_v15 = vpop.f32.mrb[9].mxu1 }
 0x126   : > { %v2188_v16 = vpop.f32.mrb[10].mxu0  ;;  %v2196_v17 = vpop.f32.mrb[10].mxu1  ;;  %2232 = vmatpush3.bf16.msra.mxu0 %v800_v6  ;;  %2240 = vmatpush3.bf16.msra.mxu1 %v802_v7 }
 0x127   : > { %v804_v18 = vpack.c.bf16 %v2188_v16, %v2187_v12  ;;  %v806_v19 = vpack.c.bf16 %v2196_v17, %v2195_v13  ;;  %v618_v20 = vpop.f32.mrb[11].mxu0  ;;  %v673_v21 = vpop.f32.mrb[11].mxu1  ;;  %2245 = vmatprep.subr.bf16.mxu0 %v2530_v50  ;;  %2253 = vmatprep.subr.bf16.mxu1 %v2530_v50 }
 0x128   : > { %v803_v22 = vpack.c.bf16 %v618_v20, %v615_v14  ;;  %v805_v23 = vpack.c.bf16 %v673_v21, %v670_v15 }
 0x129   : > { %2234 = vmatmul.mubr.msk.bf16.vlgmr.msra.gmra.mrb[20].mxu0 %vm354_vm0, %v2785_v3  ;;  %2242 = vmatmul.mubr.msk.bf16.vlgmr.msra.gmra.mrb[20].mxu1 %vm354_vm0, %v2785_v3 }
 0x12a   : > { %2246 = vmatpush3.bf16.msra.mxu0 %v803_v22  ;;  %2254 = vmatpush3.bf16.msra.mxu1 %v805_v23 }
 0x12b   : > { %2247 = vmatprep.subr.bf16.mxu0 %v2530_v50  ;;  %2255 = vmatprep.subr.bf16.mxu1 %v2530_v50 }
 0x12c   : > { %v2203_v24 = vpop.f32.mrb[12].mxu0  ;;  %v2211_v25 = vpop.f32.mrb[12].mxu1  ;;  %2249 = vmatprep.mubr.msk.bf16.mxu0 %vm2531_vm1, %v2530_v50  ;;  %2257 = vmatprep.mubr.msk.bf16.mxu1 %vm2531_vm1, %v2530_v50 }
 0x12d   : > { %v725_v26 = vpop.f32.mrb[13].mxu0  ;;  %v780_v27 = vpop.f32.mrb[13].mxu1 }
 0x12e   : > { %v2204_v28 = vpop.f32.mrb[14].mxu0  ;;  %v2212_v29 = vpop.f32.mrb[14].mxu1  ;;  %2248 = vmatpush3.bf16.msra.mxu0 %v804_v18  ;;  %2256 = vmatpush3.bf16.msra.mxu1 %v806_v19 }
 0x12f   : > { %v808_v30 = vpack.c.bf16 %v2204_v28, %v2203_v24  ;;  %v810_v31 = vpack.c.bf16 %v2212_v29, %v2211_v25  ;;  %v728_v32 = vpop.f32.mrb[15].mxu0  ;;  %v783_v33 = vpop.f32.mrb[15].mxu1  ;;  %2261 = vmatprep.subr.bf16.mxu0 %v2530_v50  ;;  %2269 = vmatprep.subr.bf16.mxu1 %v2530_v50  ;;  %v1166_v24 = vld [vmem:[%s3019_s4] sm:$0xf] }
 0x130   : > { %v807_v34 = vpack.c.bf16 %v728_v32, %v725_v26  ;;  %v809_v35 = vpack.c.bf16 %v783_v33, %v780_v27 }
 0x131   : > { %2250 = vmatmul.mubr.msk.bf16.vlgmr.msra.gmra.mrb[24].mxu0 %vm354_vm0, %v2785_v3  ;;  %2258 = vmatmul.mubr.msk.bf16.vlgmr.msra.gmra.mrb[24].mxu1 %vm354_vm0, %v2785_v3 }
 0x132   : > { %2262 = vmatpush3.bf16.msra.mxu0 %v807_v34  ;;  %2270 = vmatpush3.bf16.msra.mxu1 %v809_v35 }
 0x133   : > { %2263 = vmatprep.subr.bf16.mxu0 %v2530_v50  ;;  %2271 = vmatprep.subr.bf16.mxu1 %v2530_v50 }
 0x134   : > { %2265 = vmatprep.mubr.msk.bf16.mxu0 %vm2531_vm1, %v2530_v50  ;;  %2273 = vmatprep.mubr.msk.bf16.mxu1 %vm2531_vm1, %v2530_v50 }
 0x136   : > { %2264 = vmatpush3.bf16.msra.mxu0 %v808_v30  ;;  %2272 = vmatpush3.bf16.msra.mxu1 %v810_v31 }
 0x137   : > { %2277 = vmatprep.subr.bf16.mxu0 %v2530_v50  ;;  %2283 = vmatprep.subr.bf16.mxu1 %v2530_v50 }
 0x139   : > { %2266 = vmatmul.mubr.msk.bf16.vlgmr.msra.gmra.mrb[28].mxu0 %vm354_vm0, %v2785_v3  ;;  %2274 = vmatmul.mubr.msk.bf16.vlgmr.msra.gmra.mrb[28].mxu1 %vm354_vm0, %v2785_v3 }
 0x13a   : > { %2279 = vmatprep.mubr.msk.bf16.mxu0 %vm2531_vm1, %v2530_v50  ;;  %2285 = vmatprep.mubr.msk.bf16.mxu1 %vm2531_vm1, %v2530_v50 }
 0x13b   : > { %2278 = vmatpush3.bf16.msra.mxu0 %v2836_v36  ;;  %2284 = vmatpush3.bf16.msra.mxu1 %v2836_v36 }
 0x13c   : > { %2289 = vmatprep.subr.bf16.mxu0 %v2530_v50  ;;  %2295 = vmatprep.subr.bf16.mxu1 %v2530_v50 }
 0x1f4   : > { %v853_v37 = vpop.f32.mrb[16].mxu0  ;;  %v894_v38 = vpop.f32.mrb[16].mxu1 }
 0x1f5   : > { %1148 = vst.msk [vmem:[%s2843_s26] sm:$0xff] %vm1147_vm2, %v853_v37  ;;  %1150 = vst.msk [vmem:[%s2843_s26 + $0x10] sm:$0xff] %vm1147_vm2, %v894_v38  ;;  %v2219_v39 = vpop.f32.mrb[17].mxu0  ;;  %v2227_v40 = vpop.f32.mrb[17].mxu1 }
 0x1f6   : > { %v856_v41 = vpop.f32.mrb[18].mxu0  ;;  %v897_v42 = vpop.f32.mrb[18].mxu1 }
 0x1f7   : > { %1149 = vst.msk [vmem:[%s2843_s26 + $0x8] sm:$0xff] %vm1147_vm2, %v856_v41  ;;  %v1167_v43 = vpack.c.bf16 %v856_v41, %v853_v37  ;;  %1151 = vst.msk [vmem:[%s2843_s26 + $0x18] sm:$0xff] %vm1147_vm2, %v897_v42  ;;  %v1168_v44 = vpack.c.bf16 %v897_v42, %v894_v38  ;;  %v2220_v45 = vpop.f32.mrb[19].mxu0  ;;  %v2228_v46 = vpop.f32.mrb[19].mxu1 }
 0x1f9   : > { %2280 = vmatmul.mubr.msk.bf16.vlgmr.msra.gmra.mrb[32].mxu0 %vm1147_vm2, %v1167_v43  ;;  %2286 = vmatmul.mubr.msk.bf16.vlgmr.msra.gmra.mrb[32].mxu1 %vm1147_vm2, %v1168_v44 }
 0x1fa   : > { %2290 = vmatpush3.bf16.msra.mxu0 %v2836_v36  ;;  %2296 = vmatpush3.bf16.msra.mxu1 %v2836_v36 }
 0x1fb   : > { %2291 = vmatprep.mubr.msk.bf16.mxu0 %vm2531_vm1, %v2530_v50  ;;  %2297 = vmatprep.mubr.msk.bf16.mxu1 %vm2531_vm1, %v2530_v50 }
 0x1fc   : > { %v935_v47 = vpop.f32.mrb[20].mxu0  ;;  %v976_v48 = vpop.f32.mrb[20].mxu1  ;;  %2301 = vmatprep.subr.bf16.mxu0 %v2530_v50  ;;  %2307 = vmatprep.subr.bf16.mxu1 %v2530_v50 }
 0x1fd   : > { %1152 = vst.msk [vmem:[%s2843_s26 + $0x20] sm:$0xff] %vm1147_vm2, %v935_v47  ;;  %1154 = vst.msk [vmem:[%s2843_s26 + $0x30] sm:$0xff] %vm1147_vm2, %v976_v48  ;;  %v2235_v49 = vpop.f32.mrb[21].mxu0  ;;  %v2243_v51 = vpop.f32.mrb[21].mxu1 }
 0x1fe   : > { %v938_v52 = vpop.f32.mrb[22].mxu0  ;;  %v979_v53 = vpop.f32.mrb[22].mxu1 }
 0x1ff   : > { %1153 = vst.msk [vmem:[%s2843_s26 + $0x28] sm:$0xff] %vm1147_vm2, %v938_v52  ;;  %v1169_v54 = vpack.c.bf16 %v938_v52, %v935_v47  ;;  %1155 = vst.msk [vmem:[%s2843_s26 + $0x38] sm:$0xff] %vm1147_vm2, %v979_v53  ;;  %v1170_v55 = vpack.c.bf16 %v979_v53, %v976_v48  ;;  %v2236_v56 = vpop.f32.mrb[23].mxu0  ;;  %v2244_v57 = vpop.f32.mrb[23].mxu1 }
 0x201   : > { %2292 = vmatmul.mubr.msk.bf16.vlgmr.msra.gmra.mrb[36].mxu0 %vm1147_vm2, %v1169_v54  ;;  %2298 = vmatmul.mubr.msk.bf16.vlgmr.msra.gmra.mrb[36].mxu1 %vm1147_vm2, %v1170_v55 }
 0x202   : > { %2302 = vmatpush3.bf16.msra.mxu0 %v2836_v36  ;;  %2308 = vmatpush3.bf16.msra.mxu1 %v2836_v36 }
 0x203   : > { %2303 = vmatprep.mubr.msk.bf16.mxu0 %vm2531_vm1, %v2530_v50  ;;  %2309 = vmatprep.mubr.msk.bf16.mxu1 %vm2531_vm1, %v2530_v50 }
 0x204   : > { %v1017_v58 = vpop.f32.mrb[24].mxu0  ;;  %v1058_v59 = vpop.f32.mrb[24].mxu1  ;;  %2313 = vmatprep.subr.bf16.mxu0 %v2530_v50  ;;  %2319 = vmatprep.subr.bf16.mxu1 %v2530_v50 }
 0x205   : > { %1156 = vst.msk [vmem:[%s2843_s26 + $0x40] sm:$0xff] %vm1147_vm2, %v1017_v58  ;;  %1158 = vst.msk [vmem:[%s2843_s26 + $0x50] sm:$0xff] %vm1147_vm2, %v1058_v59  ;;  %v2251_v60 = vpop.f32.mrb[25].mxu0  ;;  %v2259_v61 = vpop.f32.mrb[25].mxu1 }
 0x206   : > { %v1020_v62 = vpop.f32.mrb[26].mxu0  ;;  %v1061_v63 = vpop.f32.mrb[26].mxu1 }
 0x207   : > { %1157 = vst.msk [vmem:[%s2843_s26 + $0x48] sm:$0xff] %vm1147_vm2, %v1020_v62  ;;  %v1171_v0 = vpack.c.bf16 %v1020_v62, %v1017_v58  ;;  %1159 = vst.msk [vmem:[%s2843_s26 + $0x58] sm:$0xff] %vm1147_vm2, %v1061_v63  ;;  %v1172_v1 = vpack.c.bf16 %v1061_v63, %v1058_v59  ;;  %v2252_v2 = vpop.f32.mrb[27].mxu0  ;;  %v2260_v3 = vpop.f32.mrb[27].mxu1 }
 0x209   : > { %2304 = vmatmul.mubr.msk.bf16.vlgmr.msra.gmra.mrb[40].mxu0 %vm1147_vm2, %v1171_v0  ;;  %2310 = vmatmul.mubr.msk.bf16.vlgmr.msra.gmra.mrb[40].mxu1 %vm1147_vm2, %v1172_v1 }
 0x20a   : > { %2314 = vmatpush3.bf16.msra.mxu0 %v2836_v36  ;;  %2320 = vmatpush3.bf16.msra.mxu1 %v2836_v36 }
 0x20b   : > { %2315 = vmatprep.mubr.msk.bf16.mxu0 %vm2531_vm1, %v2530_v50  ;;  %2321 = vmatprep.mubr.msk.bf16.mxu1 %vm2531_vm1, %v2530_v50 }
 0x20c   : > { %v1099_v4 = vpop.f32.mrb[28].mxu0  ;;  %v1140_v5 = vpop.f32.mrb[28].mxu1  ;;  %2325 = vmatprep.subr.bf16.mxu0 %v2530_v50  ;;  %2331 = vmatprep.subr.bf16.mxu1 %v2530_v50 }
 0x20d   : > { %1160 = vst.msk [vmem:[%s2843_s26 + $0x60] sm:$0xff] %vm1147_vm2, %v1099_v4  ;;  %1162 = vst.msk [vmem:[%s2843_s26 + $0x70] sm:$0xff] %vm1147_vm2, %v1140_v5  ;;  %v2267_v6 = vpop.f32.mrb[29].mxu0  ;;  %v2275_v7 = vpop.f32.mrb[29].mxu1 }
 0x20e   : > { %v1102_v8 = vpop.f32.mrb[30].mxu0  ;;  %v1143_v9 = vpop.f32.mrb[30].mxu1 }
 0x20f   : > { %1161 = vst.msk [vmem:[%s2843_s26 + $0x68] sm:$0xff] %vm1147_vm2, %v1102_v8  ;;  %v1173_v10 = vpack.c.bf16 %v1102_v8, %v1099_v4  ;;  %1163 = vst.msk [vmem:[%s2843_s26 + $0x78] sm:$0xff] %vm1147_vm2, %v1143_v9  ;;  %v1174_v11 = vpack.c.bf16 %v1143_v9, %v1140_v5  ;;  %v2268_v12 = vpop.f32.mrb[31].mxu0  ;;  %v2276_v13 = vpop.f32.mrb[31].mxu1 }
 0x211   : > { %2316 = vmatmul.mubr.msk.bf16.vlgmr.msra.gmra.mrb[44].mxu0 %vm1147_vm2, %v1173_v10  ;;  %2322 = vmatmul.mubr.msk.bf16.vlgmr.msra.gmra.mrb[44].mxu1 %vm1147_vm2, %v1174_v11 }
 0x212   : > { %2327 = vmatprep.mubr.msk.bf16.mxu0 %vm2531_vm1, %v2530_v50  ;;  %2333 = vmatprep.mubr.msk.bf16.mxu1 %vm2531_vm1, %v2530_v50 }
 0x2cc   : > { %v1218_v14 = vpop.f32.mrb[32].mxu0  ;;  %v1262_v15 = vpop.f32.mrb[32].mxu1 }
 0x2cd   : > { %v2281_v16 = vpop.f32.mrb[33].mxu0  ;;  %v2287_v17 = vpop.f32.mrb[33].mxu1 }
 0x2ce   : > { %v1221_v18 = vpop.f32.mrb[34].mxu0  ;;  %v1265_v19 = vpop.f32.mrb[34].mxu1 }
 0x2cf   : > { %v1533_v20 = vpack.c.bf16 %v1221_v18, %v1218_v14  ;;  %v1534_v21 = vpack.c.bf16 %v1265_v19, %v1262_v15  ;;  %v2282_v22 = vpop.f32.mrb[35].mxu0  ;;  %v2288_v23 = vpop.f32.mrb[35].mxu1 }
 0x2d1   : > { %2326 = vmatpush3.bf16.msra.mxu0 %v1533_v20  ;;  %2332 = vmatpush3.bf16.msra.mxu1 %v1534_v21 }
 0x2d2   : > { %2337 = vmatprep.subr.bf16.mxu0 %v2530_v50  ;;  %2343 = vmatprep.subr.bf16.mxu1 %v2530_v50 }
 0x2d4   : > { %v1306_v25 = vpop.f32.mrb[36].mxu0  ;;  %v1350_v26 = vpop.f32.mrb[36].mxu1  ;;  %2328 = vmatmul.mubr.msk.bf16.vlgmr.msra.gmra.mrb[48].mxu0 %vm1147_vm2, %v1166_v24  ;;  %2334 = vmatmul.mubr.msk.bf16.vlgmr.msra.gmra.mrb[48].mxu1 %vm1147_vm2, %v1166_v24 }
 0x2d5   : > { %v2293_v27 = vpop.f32.mrb[37].mxu0  ;;  %v2299_v28 = vpop.f32.mrb[37].mxu1  ;;  %2339 = vmatprep.mubr.msk.bf16.mxu0 %vm2531_vm1, %v2530_v50  ;;  %2345 = vmatprep.mubr.msk.bf16.mxu1 %vm2531_vm1, %v2530_v50 }
 0x2d6   : > { %v1309_v29 = vpop.f32.mrb[38].mxu0  ;;  %v1353_v30 = vpop.f32.mrb[38].mxu1 }
 0x2d7   : > { %v1535_v31 = vpack.c.bf16 %v1309_v29, %v1306_v25  ;;  %v1536_v32 = vpack.c.bf16 %v1353_v30, %v1350_v26  ;;  %v2294_v33 = vpop.f32.mrb[39].mxu0  ;;  %v2300_v34 = vpop.f32.mrb[39].mxu1 }
 0x2d9   : > { %2338 = vmatpush3.bf16.msra.mxu0 %v1535_v31  ;;  %2344 = vmatpush3.bf16.msra.mxu1 %v1536_v32 }
 0x2da   : > { %2349 = vmatprep.subr.bf16.mxu0 %v2530_v50  ;;  %2355 = vmatprep.subr.bf16.mxu1 %v2530_v50 }
 0x2dc   : > { %v1394_v35 = vpop.f32.mrb[40].mxu0  ;;  %v1438_v36 = vpop.f32.mrb[40].mxu1  ;;  %2340 = vmatmul.mubr.msk.bf16.vlgmr.msra.gmra.mrb[52].mxu0 %vm1147_vm2, %v1166_v24  ;;  %2346 = vmatmul.mubr.msk.bf16.vlgmr.msra.gmra.mrb[52].mxu1 %vm1147_vm2, %v1166_v24 }
 0x2dd   : > { %v2305_v37 = vpop.f32.mrb[41].mxu0  ;;  %v2311_v38 = vpop.f32.mrb[41].mxu1  ;;  %2351 = vmatprep.mubr.msk.bf16.mxu0 %vm2531_vm1, %v2530_v50  ;;  %2357 = vmatprep.mubr.msk.bf16.mxu1 %vm2531_vm1, %v2530_v50 }
 0x2de   : > { %v1397_v39 = vpop.f32.mrb[42].mxu0  ;;  %v1441_v40 = vpop.f32.mrb[42].mxu1 }
 0x2df   : > { %v1537_v41 = vpack.c.bf16 %v1397_v39, %v1394_v35  ;;  %v1538_v42 = vpack.c.bf16 %v1441_v40, %v1438_v36  ;;  %v2306_v43 = vpop.f32.mrb[43].mxu0  ;;  %v2312_v44 = vpop.f32.mrb[43].mxu1 }
 0x2e1   : > { %2350 = vmatpush3.bf16.msra.mxu0 %v1537_v41  ;;  %2356 = vmatpush3.bf16.msra.mxu1 %v1538_v42 }
 0x2e2   : > { %2361 = vmatprep.subr.bf16.mxu0 %v2530_v50  ;;  %2367 = vmatprep.subr.bf16.mxu1 %v2530_v50 }
 0x2e4   : > { %v1482_v45 = vpop.f32.mrb[44].mxu0  ;;  %v1526_v46 = vpop.f32.mrb[44].mxu1  ;;  %2352 = vmatmul.mubr.msk.bf16.vlgmr.msra.gmra.mrb[56].mxu0 %vm1147_vm2, %v1166_v24  ;;  %2358 = vmatmul.mubr.msk.bf16.vlgmr.msra.gmra.mrb[56].mxu1 %vm1147_vm2, %v1166_v24 }
 0x2e5   : > { %v2317_v47 = vpop.f32.mrb[45].mxu0  ;;  %v2323_v48 = vpop.f32.mrb[45].mxu1  ;;  %2363 = vmatprep.mubr.msk.bf16.mxu0 %vm2531_vm1, %v2530_v50  ;;  %2369 = vmatprep.mubr.msk.bf16.mxu1 %vm2531_vm1, %v2530_v50 }
 0x2e6   : > { %v1485_v49 = vpop.f32.mrb[46].mxu0  ;;  %v1529_v51 = vpop.f32.mrb[46].mxu1 }
 0x2e7   : > { %v1539_v52 = vpack.c.bf16 %v1485_v49, %v1482_v45  ;;  %v1540_v53 = vpack.c.bf16 %v1529_v51, %v1526_v46  ;;  %v2318_v54 = vpop.f32.mrb[47].mxu0  ;;  %v2324_v55 = vpop.f32.mrb[47].mxu1 }
 0x2e9   : > { %2362 = vmatpush3.bf16.msra.mxu0 %v1539_v52  ;;  %2368 = vmatpush3.bf16.msra.mxu1 %v1540_v53 }
 0x2ec   : > { %2364 = vmatmul.mubr.msk.bf16.vlgmr.msra.gmra.mrb[60].mxu0 %vm1147_vm2, %v1166_v24  ;;  %2370 = vmatmul.mubr.msk.bf16.vlgmr.msra.gmra.mrb[60].mxu1 %vm1147_vm2, %v1166_v24 }
 0x2ed   : > { %2472 = shalt.err (!%p2469_p2)
}
 0x2ee   : > { %s2473_s17 = scalar_lea.hbm %s2947_s19, 2048  ;;  %s2477_s7 = scalar_lea.hbm %s3020_s5, 4096 }
 0x2ef   : > { %p2474_p4 = scmp.ne.s32.totalorder %s2947_s19, %s2473_s17  ;;  %p2478_p9 = scmp.lt.u32.totalorder %s2947_s19, %s3020_s5 }
 0x2f0   : > { %p2479_p1 = scmp.lt.u32.totalorder %s2477_s7, %s2473_s17  ;;  %p2481_p6 = scmp.lt.u32.totalorder %s2473_s17, %s2947_s19 }
 0x2f1   : > { %p2475_p5 = pnand %p2474_p4, %p3028_p11 }
 0x2f2   : > { %p2480_p3 = por %p2479_p1, %p2478_p9 }
 0x2f3   : > { %p2476_p7 = pneg %p2475_p5 }
 0x2f4   : > { %p2482_p12 = por %p2481_p6, %p2480_p3 }
 0x2f6   : > { %p2483_p13 = pnand %p2482_p12, %p2476_p7 }
 0x2f8   : > { %2486 = shalt.err (!%p2483_p13)
}
 0x2f9   : > { %s2533_s18 = smov 128   ;;  %s2534_s8 = smov 8   ;;  %vm1864_vm3 = vcmask 64512  }
 0x2fa   : > { %2375 = dma.vmem_to_hbm [thread:$0]  (%p3028_p11), %s2949_s13, 2048, %s2947_s19, %s1874_s20, %s2533_s18, %s2533_s18, %s2534_s8  }
 0x2fb   : > { %s2005_s11 = sshll.u32 %s2591_s25, 3 }
 0x2fc   : > { %p282_p8 = scmp.lt.s32.totalorder %s2005_s11, 15 }
 0x2fe   : > { %s3036_s11 = smov (!%p282_p8, %s2005_s11), 15 }
 0x2ff   : > { %s2006_s14 = sshll.u32 %s3036_s11, 3 }
 0x300   : > { %s2979_s17 = scalar_lea.vmem %s3021_s6, %s2006_s14 }
 0x3a7   : > { %v1578_v50 = vpop.f32.mrb[48].mxu0  ;;  %v1618_v56 = vpop.f32.mrb[48].mxu1 }
 0x3a8   : > { %1865 = vst.msk [vmem:[%s2979_s17] sm:$0xff] %vm1864_vm3, %v1578_v50  ;;  %1866 = vst.msk [vmem:[%s2979_s17 + $0x8] sm:$0xff] %vm1864_vm3, %v1618_v56  ;;  %v2329_v57 = vpop.f32.mrb[49].mxu0  ;;  %v2335_v58 = vpop.f32.mrb[49].mxu1 }
 0x3a9   : > { %v1581_v59 = vpop.f32.mrb[50].mxu0  ;;  %v1621_v60 = vpop.f32.mrb[50].mxu1 }
 0x3aa   : > { %v2330_v61 = vpop.f32.mrb[51].mxu0  ;;  %v2336_v62 = vpop.f32.mrb[51].mxu1 }
 0x3af   : > { %v1658_v63 = vpop.f32.mrb[52].mxu0  ;;  %v1698_v0 = vpop.f32.mrb[52].mxu1 }
 0x3b0   : > { %1867 = vst.msk [vmem:[%s2979_s17 + $0x10] sm:$0xff] %vm1864_vm3, %v1658_v63  ;;  %1868 = vst.msk [vmem:[%s2979_s17 + $0x18] sm:$0xff] %vm1864_vm3, %v1698_v0  ;;  %v2341_v1 = vpop.f32.mrb[53].mxu0  ;;  %v2347_v2 = vpop.f32.mrb[53].mxu1 }
 0x3b1   : > { %v1661_v3 = vpop.f32.mrb[54].mxu0  ;;  %v1701_v4 = vpop.f32.mrb[54].mxu1 }
 0x3b2   : > { %v2342_v5 = vpop.f32.mrb[55].mxu0  ;;  %v2348_v6 = vpop.f32.mrb[55].mxu1 }
 0x3b7   : > { %v1738_v7 = vpop.f32.mrb[56].mxu0  ;;  %v1778_v8 = vpop.f32.mrb[56].mxu1 }
 0x3b8   : > { %1869 = vst.msk [vmem:[%s2979_s17 + $0x20] sm:$0xff] %vm1864_vm3, %v1738_v7  ;;  %1870 = vst.msk [vmem:[%s2979_s17 + $0x28] sm:$0xff] %vm1864_vm3, %v1778_v8  ;;  %v2353_v9 = vpop.f32.mrb[57].mxu0  ;;  %v2359_v10 = vpop.f32.mrb[57].mxu1 }
 0x3b9   : > { %v1741_v11 = vpop.f32.mrb[58].mxu0  ;;  %v1781_v12 = vpop.f32.mrb[58].mxu1 }
 0x3ba   : > { %v2354_v13 = vpop.f32.mrb[59].mxu0  ;;  %v2360_v14 = vpop.f32.mrb[59].mxu1 }
 0x3bf   : > { %v1818_v15 = vpop.f32.mrb[60].mxu0  ;;  %v1858_v16 = vpop.f32.mrb[60].mxu1 }
 0x3c0   : > { %1871 = vst.msk [vmem:[%s2979_s17 + $0x30] sm:$0xff] %vm1864_vm3, %v1818_v15  ;;  %1872 = vst.msk [vmem:[%s2979_s17 + $0x38] sm:$0xff] %vm1864_vm3, %v1858_v16  ;;  %v2365_v17 = vpop.f32.mrb[61].mxu0  ;;  %v2371_v18 = vpop.f32.mrb[61].mxu1 }
 0x3c1   : > { %v1821_v19 = vpop.f32.mrb[62].mxu0  ;;  %v1861_v20 = vpop.f32.mrb[62].mxu1 }
 0x3c2   : > { %v2366_v21 = vpop.f32.mrb[63].mxu0  ;;  %v2372_v22 = vpop.f32.mrb[63].mxu1 }
 0x3c3 PF: > { %s1912_s25 = sand.u32 1, %s2513_s21   ;;  %p3029_p11 = scmp.ne.s32.totalorder %s3026_s10, 0 }
 0x3c4   : > { %p3030_p10 = scmp.ge.s32.totalorder %s2525_s24, 2  ;;  %s1913_s9 = scalar_lea.sflag [#allocation4], %s1912_s25 }
 0x3c6   : > { %p2382_p0 = pnand %p3030_p10, %p3029_p11 }
 0x3c8   : > { %2508 = dma.done.wait (!%p2382_p0), %s1913_s9, 2048  }
 0x3c9   : > { %2510 = vsyncadd (!%p2382_p0), %s1913_s9, 4294965248  ;;  %p20_p2 = scmp.ge.s32.totalorder %s2595_s27, 4   ;;  %s3031_s21 = smov %s2517_s22 }
 0x3ca   : > { %s3032_s22 = smov %s2521_s23  ;;  %s3033_s23 = smov %s2607_s30 }
 0x3cb   : > { %s3034_s24 = smov %s2595_s27  ;;  %22 = sbr.rel (!%p20_p2) target bundleno = 5 (0x5), region = 97 }
 0x3d2   :  { %1926 = vsyncpa [#allocation3], 1 }
 0x3d3   :  { %1928 = vsyncpa [#allocation3 + $0x1], 1 }
 0x3d4   :  { %1929 = vsyncpa [#allocation4], 1 }
 0x3d5   :  { %1931 = vsyncpa [#allocation4 + $0x1], 1 }

</bundles_post_ra>
